<compile_context>
chip_gen: v5e
topology: v5e:2x2
jax: 0.10.0
libtpu: 0.0.40
codegen_flags: <defaults>
</compile_context>

<pallas_src>
import math

import jax
import jax.numpy as jnp
from jax.experimental import pallas as pl
from jax.experimental.pallas import tpu as pltpu


def _self_attentive_kernel(x_ref, w1_ref, w2_ref, s_ref, st_ref, sel_ref, mask_ref,
                           m_ref, a_ref):
    # x_ref:    (BL, D)      block of block_b flattened sequences (BL = block_b * L)
    # w1_ref:   (U, D)       resident across grid steps
    # w2_ref:   (H, U)       resident
    # s_ref:    (BL, BB)     segment matrix   S[c, b]   = (c // L == b)          resident
    # st_ref:   (BB, BL)     S transposed                                         resident
    # sel_ref:  (BB*H, H)    row-replication  sel[r, h] = (r % H == h)            resident
    # mask_ref: (BB*H, BL)   block-diag mask  mask[r,c] = (c // L == r // H)      resident
    x2 = x_ref[...]                                   # (BL, D), storage dtype
    cdt = x2.dtype

    # hbar^T = tanh(W1 @ x^T) -> (U, BL): lane-dense, tanh runs on packed vregs.
    hbar_t = jnp.tanh(
        jax.lax.dot_general(w1_ref[...], x2, (((1,), (1,)), ((), ())),
                            preferred_element_type=jnp.float32))         # (U, BL) f32

    # logits^T = W2 @ hbar^T -> (H, BL): lane-dense softmax operand.
    logits_t = jax.lax.dot_general(
        w2_ref[...], hbar_t.astype(cdt), (((1,), (0,)), ((), ())),
        preferred_element_type=jnp.float32)                               # (H, BL) f32

    # Segmented (per-sequence) softmax over groups of L lanes.  Subtracting the per-row
    # max is exact (any per-row constant cancels in the normalization) and keeps exp<=1.
    mx = jnp.max(logits_t, axis=-1, keepdims=True)                        # (H, 1)
    e = jnp.exp(logits_t - mx)                                            # (H, BL) f32

    # Per-sequence denominators via two thin MXU matmuls (no lane<->sublane relayout):
    #   (H, BL) @ (BL, BB) -> per-sequence sums (H, BB); @ (BB, BL) broadcasts back.
    denom_seq = jax.lax.dot_general(e.astype(cdt), s_ref[...],
                                    (((1,), (0,)), ((), ())),
                                    preferred_element_type=jnp.float32)   # (H, BB)
    denom = jax.lax.dot_general(denom_seq.astype(cdt), st_ref[...],
                                (((1,), (0,)), ((), ())),
                                preferred_element_type=jnp.float32)       # (H, BL)
    alphas_t = e * pl.reciprocal(denom, approx=True)                      # (H, BL) f32

    # Lane-dense alphas store: block (H, BL) of the (H, b_pad*L) output.
    a_ref[...] = alphas_t.astype(a_ref.dtype)

    # M for all block_b sequences as ONE block-diagonal MXU matmul:
    #   replicate the H alpha rows to BB*H rows (tiny K=H matmul on the MXU slot),
    #   mask to the block diagonal with the resident 0/1 mask, contract K = BL against x.
    a_rep = jax.lax.dot_general(sel_ref[...], alphas_t.astype(cdt),
                                (((1,), (0,)), ((), ())),
                                preferred_element_type=jnp.float32)       # (BB*H, BL)
    a_bd = a_rep.astype(cdt) * mask_ref[...]                              # block-diagonal
    m_flat = jax.lax.dot_general(a_bd, x2, (((1,), (0,)), ((), ())),
                                 preferred_element_type=jnp.float32)      # (BB*H, D)
    m_ref[...] = m_flat.astype(m_ref.dtype)


def self_attentive_encoder(outp, w1, w2, *, block_b=None):
    """outp: (B, L, D) or (L, D); w1: (U, D); w2: (H, U).

    Returns (M: (B, H, D), alphas: (B, H, L)); B == 1 reproduces the PyTorch
    module's (1, H, D), (1, H, L).
    """
    if outp.ndim == 2:
        outp = outp[None]
    B, L, D = outp.shape
    U, D2 = w1.shape
    H, U2 = w2.shape
    assert D2 == D and U2 == U

    cdt = outp.dtype
    w1 = w1.astype(cdt)
    w2 = w2.astype(cdt)

    if block_b is None:
        # `unit`: smallest block_b with BL % 128 == 0 (lane-dense alphas block) and
        # block_b*H % 8 == 0 (sublane-dense M block).
        unit = max(128 // math.gcd(128, L), 1)
        while (unit * H) % 8:
            unit *= 2
        # Target BL ~512: big enough to amortize per-step pipeline overhead, small
        # enough that the (block_b*H, BL) block-diagonal intermediates stay a few
        # hundred KiB (well inside every chip's scoped VMEM default).
        want = unit * max(1, -(-512 // (L * unit)))
        b_units = -(-B // unit)                 # padded batch measured in units
        if b_units >= 2:
            # Keep >= 2 grid steps so the "parallel" batch axis can use both
            # TensorCores on v7x (harmless on single-TC v5e/v6e).
            want = min(want, max(1, b_units // 2) * unit)
        block_b = max(unit, min(want, b_units * unit))

    # Pad the batch to a multiple of block_b; zero sequences are harmless (segmented
    # softmax keeps sequences independent, padded rows get uniform alphas) and are
    # sliced off below.
    b_pad = -(-B // block_b) * block_b
    if b_pad != B:
        outp = jnp.concatenate(
            [outp, jnp.zeros((b_pad - B, L, D), outp.dtype)], axis=0)

    # Flatten in the wrapper (free HBM metadata), not in the kernel.
    x2 = outp.reshape(b_pad * L, D)

    BB, BL = block_b, block_b * L
    # Constant 0/1 structure matrices, hoisted out of the kernel body (resident in VMEM
    # via constant index_map). Exactly representable in bf16/f32.
    col_seq = jnp.arange(BL, dtype=jnp.int32) // L
    seg = (col_seq[:, None] == jnp.arange(BB, dtype=jnp.int32)[None, :]).astype(cdt)
    seg_t = seg.T
    sel = (jnp.arange(BB * H, dtype=jnp.int32)[:, None] % H
           == jnp.arange(H, dtype=jnp.int32)[None, :]).astype(cdt)
    mask_bd = (jnp.arange(BB * H, dtype=jnp.int32)[:, None] // H
               == col_seq[None, :]).astype(cdt)

    grid = (b_pad // block_b,)
    m_flat, alphas_t = pl.pallas_call(
        _self_attentive_kernel,
        out_shape=(
            jax.ShapeDtypeStruct((b_pad * H, D), cdt),
            jax.ShapeDtypeStruct((H, b_pad * L), cdt),
        ),
        grid_spec=pltpu.PrefetchScalarGridSpec(
            num_scalar_prefetch=0,
            grid=grid,
            in_specs=[
                pl.BlockSpec((BL, D), lambda i: (i, 0)),
                pl.BlockSpec((U, D), lambda i: (0, 0)),          # resident
                pl.BlockSpec((H, U), lambda i: (0, 0)),          # resident
                pl.BlockSpec((BL, BB), lambda i: (0, 0)),        # resident
                pl.BlockSpec((BB, BL), lambda i: (0, 0)),        # resident
                pl.BlockSpec((BB * H, H), lambda i: (0, 0)),     # resident
                pl.BlockSpec((BB * H, BL), lambda i: (0, 0)),    # resident
            ],
            out_specs=[
                pl.BlockSpec((BB * H, D), lambda i: (i, 0)),
                pl.BlockSpec((H, BL), lambda i: (0, i)),         # lane-dense store
            ],
        ),
        compiler_params=pltpu.CompilerParams(
            dimension_semantics=("parallel",)),   # megacore sharding on v7x
    )(x2, w1, w2, seg, seg_t, sel, mask_bd)

    # Layout plumbing back to the PyTorch shapes (free reshape + one tiny transpose).
    M = m_flat.reshape(b_pad, H, D)[:B]
    alphas = alphas_t.reshape(H, b_pad, L).transpose(1, 0, 2)[:B]
    return M, alphas


def _reference(outp, w1, w2):
    hbar = jnp.tanh(jnp.einsum('bld,ud->blu', outp, w1))
    logits = jnp.einsum('blu,hu->blh', hbar, w2)
    alphas = jax.nn.softmax(jnp.swapaxes(logits, 1, 2), axis=-1)   # (B, H, L)
    M = jnp.einsum('bhl,bld->bhd', alphas, outp)
    return M, alphas


if __name__ == "__main__":
    # Module hyperparameters (consistent with __init__), batched for throughput.
    mem_dim, att_units, att_hops, maxlen = 32, 16, 4, 8
    batch = 128

    key = jax.random.PRNGKey(0)
    k_out, k_w1, k_w2 = jax.random.split(key, 3)

    outp = jax.random.normal(k_out, (batch, maxlen, mem_dim), dtype=jnp.float32)
    w1 = jax.random.uniform(k_w1, (att_units, mem_dim), jnp.float32, -0.1, 0.1)
    w2 = jax.random.uniform(k_w2, (att_hops, att_units), jnp.float32, -0.1, 0.1)

    M, alphas = self_attentive_encoder(outp, w1, w2)
    M = jax.block_until_ready(M)
    alphas = jax.block_until_ready(alphas)

    M_ref, A_ref = _reference(outp, w1, w2)
    assert M.shape == (batch, att_hops, mem_dim)
    assert alphas.shape == (batch, att_hops, maxlen)
    # Tolerance covers the EUP fast reciprocal (pl.reciprocal approx=True) used for the
    # softmax normalization.
    assert jnp.allclose(M, M_ref, atol=5e-3, rtol=5e-3)
    assert jnp.allclose(alphas, A_ref, atol=5e-3, rtol=5e-3)

    # Module-exact path: a single (L, D) sequence -> (1, H, D), (1, H, L).
    M1, A1 = self_attentive_encoder(outp[0], w1, w2)
    M1 = jax.block_until_ready(M1)
    A1 = jax.block_until_ready(A1)
    assert M1.shape == (1, att_hops, mem_dim) and A1.shape == (1, att_hops, maxlen)
    assert jnp.allclose(M1, M_ref[:1], atol=5e-3, rtol=5e-3)
    assert jnp.allclose(A1, A_ref[:1], atol=5e-3, rtol=5e-3)

    print("KERNEL_OK")
</pallas_src>

<mosaic_0001>
module attributes {stable_mosaic.version = 11 : i64} {
  func.func @_self_attentive_kernel(%arg0: i32, %arg1: memref<512x32xf32, #tpu.memory_space<vmem>>, %arg2: memref<16x32xf32, #tpu.memory_space<vmem>>, %arg3: memref<4x16xf32, #tpu.memory_space<vmem>>, %arg4: memref<512x64xf32, #tpu.memory_space<vmem>>, %arg5: memref<64x512xf32, #tpu.memory_space<vmem>>, %arg6: memref<256x4xf32, #tpu.memory_space<vmem>>, %arg7: memref<256x512xf32, #tpu.memory_space<vmem>>, %arg8: memref<256x32xf32, #tpu.memory_space<vmem>>, %arg9: memref<4x512xf32, #tpu.memory_space<vmem>>) attributes {dimension_semantics = [#tpu.dimension_semantics<parallel>], iteration_bounds = array<i64: 2>, scalar_prefetch = 0 : i64, scratch_operands = 0 : i64, tpu.core_type = #tpu.core_type<tc>, window_params = [{transform_indices = @transform_0, window_bounds = array<i64: 512, 32>}, {pipeline_mode = #tpu.pipeline_mode<synchronous>, transform_indices = @transform_1, window_bounds = array<i64: 16, 32>}, {pipeline_mode = #tpu.pipeline_mode<synchronous>, transform_indices = @transform_2, window_bounds = array<i64: 4, 16>}, {pipeline_mode = #tpu.pipeline_mode<synchronous>, transform_indices = @transform_3, window_bounds = array<i64: 512, 64>}, {pipeline_mode = #tpu.pipeline_mode<synchronous>, transform_indices = @transform_4, window_bounds = array<i64: 64, 512>}, {pipeline_mode = #tpu.pipeline_mode<synchronous>, transform_indices = @transform_5, window_bounds = array<i64: 256, 4>}, {pipeline_mode = #tpu.pipeline_mode<synchronous>, transform_indices = @transform_6, window_bounds = array<i64: 256, 512>}, {transform_indices = @transform_7, window_bounds = array<i64: 256, 32>}, {transform_indices = @transform_8, window_bounds = array<i64: 4, 512>}]} {
    %c0 = arith.constant 0 : index
    %c0_0 = arith.constant 0 : index
    %0 = vector.load %arg1[%c0, %c0_0] : memref<512x32xf32, #tpu.memory_space<vmem>>, vector<512x32xf32>
    %c0_1 = arith.constant 0 : index
    %c0_2 = arith.constant 0 : index
    %1 = vector.load %arg2[%c0_1, %c0_2] : memref<16x32xf32, #tpu.memory_space<vmem>>, vector<16x32xf32>
    %cst = arith.constant dense<0.000000e+00> : vector<16x512xf32>
    %2 = tpu.matmul %1, %0, %cst {dimension_numbers = #tpu.dot_dimension_numbers<[1], [1], [0], [0], [0, 0, 1, 0], [], []>} : vector<16x32xf32>, vector<512x32xf32>, vector<16x512xf32> -> vector<16x512xf32>
    %3 = math.tanh %2 : vector<16x512xf32>
    %c0_3 = arith.constant 0 : index
    %c0_4 = arith.constant 0 : index
    %4 = vector.load %arg3[%c0_3, %c0_4] : memref<4x16xf32, #tpu.memory_space<vmem>>, vector<4x16xf32>
    %cst_5 = arith.constant dense<0.000000e+00> : vector<4x512xf32>
    %5 = tpu.matmul %4, %3, %cst_5 {dimension_numbers = #tpu.dot_dimension_numbers<[1], [0], [0], [1], [0, 0, 1, 1], [], []>} : vector<4x16xf32>, vector<16x512xf32>, vector<4x512xf32> -> vector<4x512xf32>
    %cst_6 = arith.constant dense<0xFF800000> : vector<4xf32>
    %6 = vector.multi_reduction <maximumf>, %5, %cst_6 [1] : vector<4x512xf32> to vector<4xf32>
    %7 = vector.shape_cast %6 : vector<4xf32> to vector<4x1xf32>
    %8 = vector.broadcast %7 : vector<4x1xf32> to vector<4x512xf32>
    %9 = arith.subf %5, %8 : vector<4x512xf32>
    %10 = math.exp %9 : vector<4x512xf32>
    %c0_7 = arith.constant 0 : index
    %c0_8 = arith.constant 0 : index
    %11 = vector.load %arg4[%c0_7, %c0_8] : memref<512x64xf32, #tpu.memory_space<vmem>>, vector<512x64xf32>
    %cst_9 = arith.constant dense<0.000000e+00> : vector<4x64xf32>
    %12 = tpu.matmul %10, %11, %cst_9 {dimension_numbers = #tpu.dot_dimension_numbers<[1], [0], [0], [1], [0, 0, 1, 1], [], []>} : vector<4x512xf32>, vector<512x64xf32>, vector<4x64xf32> -> vector<4x64xf32>
    %c0_10 = arith.constant 0 : index
    %c0_11 = arith.constant 0 : index
    %13 = vector.load %arg5[%c0_10, %c0_11] : memref<64x512xf32, #tpu.memory_space<vmem>>, vector<64x512xf32>
    %cst_12 = arith.constant dense<0.000000e+00> : vector<4x512xf32>
    %14 = tpu.matmul %12, %13, %cst_12 {dimension_numbers = #tpu.dot_dimension_numbers<[1], [0], [0], [1], [0, 0, 1, 1], [], []>} : vector<4x64xf32>, vector<64x512xf32>, vector<4x512xf32> -> vector<4x512xf32>
    %15 = tpu.reciprocal %14 {approx = true} : vector<4x512xf32> -> vector<4x512xf32>
    %16 = arith.mulf %10, %15 : vector<4x512xf32>
    %c0_13 = arith.constant 0 : index
    %c0_14 = arith.constant 0 : index
    %17 = vector.load %arg9[%c0_13, %c0_14] : memref<4x512xf32, #tpu.memory_space<vmem>>, vector<4x512xf32>
    tpu.vector_store %arg9[%c0_13, %c0_14], %16 {strides = array<i32>} : memref<4x512xf32, #tpu.memory_space<vmem>>, vector<4x512xf32>,
    %c0_15 = arith.constant 0 : index
    %c0_16 = arith.constant 0 : index
    %18 = vector.load %arg6[%c0_15, %c0_16] : memref<256x4xf32, #tpu.memory_space<vmem>>, vector<256x4xf32>
    %cst_17 = arith.constant dense<0.000000e+00> : vector<256x512xf32>
    %19 = tpu.matmul %18, %16, %cst_17 {dimension_numbers = #tpu.dot_dimension_numbers<[1], [0], [0], [1], [0, 0, 1, 1], [], []>} : vector<256x4xf32>, vector<4x512xf32>, vector<256x512xf32> -> vector<256x512xf32>
    %c0_18 = arith.constant 0 : index
    %c0_19 = arith.constant 0 : index
    %20 = vector.load %arg7[%c0_18, %c0_19] : memref<256x512xf32, #tpu.memory_space<vmem>>, vector<256x512xf32>
    %21 = arith.mulf %19, %20 : vector<256x512xf32>
    %cst_20 = arith.constant dense<0.000000e+00> : vector<256x32xf32>
    %22 = tpu.matmul %21, %0, %cst_20 {dimension_numbers = #tpu.dot_dimension_numbers<[1], [0], [0], [1], [0, 0, 1, 1], [], []>} : vector<256x512xf32>, vector<512x32xf32>, vector<256x32xf32> -> vector<256x32xf32>
    %c0_21 = arith.constant 0 : index
    %c0_22 = arith.constant 0 : index
    %23 = vector.load %arg8[%c0_21, %c0_22] : memref<256x32xf32, #tpu.memory_space<vmem>>, vector<256x32xf32>
    tpu.vector_store %arg8[%c0_21, %c0_22], %22 {strides = array<i32>} : memref<256x32xf32, #tpu.memory_space<vmem>>, vector<256x32xf32>,
    return
  }
  func.func @transform_0(%arg0: i32) -> (i32, i32) {
    %c0_i32 = arith.constant 0 : i32
    %c0_i32_0 = arith.constant 0 : i32
    return %arg0, %c0_i32 : i32, i32
  }
  func.func @transform_1(%arg0: i32) -> (i32, i32) {
    %c0_i32 = arith.constant 0 : i32
    %c0_i32_0 = arith.constant 0 : i32
    %c0_i32_1 = arith.constant 0 : i32
    return %c0_i32, %c0_i32_0 : i32, i32
  }
  func.func @transform_2(%arg0: i32) -> (i32, i32) {
    %c0_i32 = arith.constant 0 : i32
    %c0_i32_0 = arith.constant 0 : i32
    %c0_i32_1 = arith.constant 0 : i32
    return %c0_i32, %c0_i32_0 : i32, i32
  }
  func.func @transform_3(%arg0: i32) -> (i32, i32) {
    %c0_i32 = arith.constant 0 : i32
    %c0_i32_0 = arith.constant 0 : i32
    %c0_i32_1 = arith.constant 0 : i32
    return %c0_i32, %c0_i32_0 : i32, i32
  }
  func.func @transform_4(%arg0: i32) -> (i32, i32) {
    %c0_i32 = arith.constant 0 : i32
    %c0_i32_0 = arith.constant 0 : i32
    %c0_i32_1 = arith.constant 0 : i32
    return %c0_i32, %c0_i32_0 : i32, i32
  }
  func.func @transform_5(%arg0: i32) -> (i32, i32) {
    %c0_i32 = arith.constant 0 : i32
    %c0_i32_0 = arith.constant 0 : i32
    %c0_i32_1 = arith.constant 0 : i32
    return %c0_i32, %c0_i32_0 : i32, i32
  }
  func.func @transform_6(%arg0: i32) -> (i32, i32) {
    %c0_i32 = arith.constant 0 : i32
    %c0_i32_0 = arith.constant 0 : i32
    %c0_i32_1 = arith.constant 0 : i32
    return %c0_i32, %c0_i32_0 : i32, i32
  }
  func.func @transform_7(%arg0: i32) -> (i32, i32) {
    %c0_i32 = arith.constant 0 : i32
    %c0_i32_0 = arith.constant 0 : i32
    return %arg0, %c0_i32 : i32, i32
  }
  func.func @transform_8(%arg0: i32) -> (i32, i32) {
    %c0_i32 = arith.constant 0 : i32
    %c0_i32_0 = arith.constant 0 : i32
    return %c0_i32, %arg0 : i32, i32
  }
}

</mosaic_0001>

<bundles_post_ra>
// kernel: tpu_custom_call.1
= control target key start
LH: loop header
LB: loop body
LE: loop exit
PB: predicated region body
PF: predicated region fallthrough
CT: control target
= control target key end

     0   :  { %14 = vsyncpa [#allocation3], 0  ;;  %s4807_s0 = inlined_call_operand.vmem [shape: f32[1024,32], index: 0, kind: input, shape index: {}]   ;;  %s4808_s1 = inlined_call_operand.vmem [shape: f32[16,32], index: 1, kind: input, shape index: {}]   ;;  %s4809_s2 = inlined_call_operand.vmem [shape: f32[4,16], index: 2, kind: input, shape index: {}]   ;;  %s4810_s3 = inlined_call_operand.vmem [shape: f32[512,64], index: 3, kind: input, shape index: {}]   ;;  %s4811_s4 = inlined_call_operand.vmem [shape: f32[64,512], index: 4, kind: input, shape index: {}]   ;;  %s4812_s5 = inlined_call_operand.vmem [shape: f32[256,4], index: 5, kind: input, shape index: {}]   ;;  %s4813_s6 = inlined_call_operand.vmem [shape: f32[256,512], index: 6, kind: input, shape index: {}]   ;;  %s4814_s7 = inlined_call_operand.vmem [shape: f32[512,32], index: 7, kind: output, shape index: {0}]   ;;  %s4815_s8 = inlined_call_operand.hbm [shape: f32[4,1024], index: 8, kind: output, shape index: {1}]  }
   0x1   :  { %16 = vsyncpa [#allocation3 + $0x1], 0  ;;  %s2919_s27 = smov 0   ;;  %s2921_s28 = smov 0  }
   0x2   :  { %s2923_s29 = smov 0   ;;  %s2925_s30 = smov 0  }
   0x3 LB: > { %s2940_s9 = sadd.s32 4294967295, %s2872_s30   ;;  %s2512_s10 = sadd.s32 4294967294, %s2872_s30   ;;  %s2872_s30 = sphi %s2925_s30, %s4920_s30   ;;  %s2868_s29 = sphi %s2923_s29, %s4919_s29   ;;  %s2864_s28 = sphi %s2921_s28, %s4918_s28   ;;  %s2860_s27 = sphi %s2919_s27, %s4917_s27  }
   0x4   : > { %s2944_s11 = sadd.s32 1, %s2872_s30   ;;  %s207_s12 = sadd.s32 1, %s2868_s29 }
   0x5   : > { %s204_s13 = ssub.s32 %s2872_s30, %s2944_s11  ;;  %p217_p0 = scmp.ne.s32.totalorder %s2868_s29, %s2864_s28 }
   0x6   : > { %p205_p1 = scmp.eq.s32.totalorder %s204_s13, 0  ;;  %p218_p2 = scmp.eq.s32.totalorder %s2940_s9, 1 }
   0x7   : > { %p223_p3 = scmp.ne.s32.totalorder %s2864_s28, %s2860_s27  ;;  %p224_p4 = scmp.eq.s32.totalorder %s2512_s10, 1 }
   0x8   : > { %s2955_s14 = scalar_select %p205_p1, %s2868_s29, %s207_s12  }
   0x9   : > { %p2957_p5 = por %p218_p2, %p217_p0  ;;  %p2961_p6 = por %p224_p4, %p223_p3 }
   0xa   : > { %p2515_p7 = scmp.ge.s32.totalorder %s2872_s30, 1  ;;  %p269_p8 = scmp.lt.s32.totalorder %s2872_s30, 3 }
   0xc   : > { %p270_p9 = pnand %p2515_p7, %p269_p8 }
   0xe   : > { %273 = sbr.rel (%p270_p9) target bundleno = 1426 (0x592), region = 48 }
  0x13   : > { %s2517_s17 = sshll.u32 %s2940_s9, 6  ;;  %vm387_vm0 = vcmask 261120   ;;  %vm687_vm1 = vcmask 130048   ;;  %vm771_vm2 = vcmask 1043456   ;;  %vm969_vm3 = vcmask 523264   ;;  %s305_s25 = sand.u32 1, %s2864_s28  }
  0x14   : > { %p309_p10 = scmp.lt.s32.totalorder %s2517_s17, 127  ;;  %vm1105_vm4 = vcmask 31744   ;;  %s2516_s12 = sshll.u32 %s305_s25, 4 }
  0x15   : > { %s3646_s13 = scalar_lea.vmem [#allocation2], %s2516_s12  ;;  %s2519_s24 = sshll.u32 %s2940_s9, 5 }
  0x16   : > { %s4922_s17 = smov (!%p309_p10, %s2517_s17), 127  ;;  %p315_p11 = scmp.lt.s32.totalorder %s2519_s24, 63 }
  0x17   : > { %s2518_s18 = sshll.u32 %s4922_s17, 3  ;;  %s2425_s10 = sshll.u32 %s3646_s13, 4  ;;  %s2426_s10 = int_to_ptr.vmem [resolvable:$true] %s2425_s10 }
  0x18   : > { %s2971_s21 = scalar_lea.vmem %s4807_s0, %s2518_s18  ;;  %s4924_s24 = smov (!%p315_p11, %s2519_s24), 63 }
  0x19   : > { %v2974_v0 = vld [vmem:[%s2971_s21 + $0x178] sm:$0xff]  ;;  %v2994_v4 = vld [vmem:[%s2971_s21 + $0x170] sm:$0xff]  ;;  %v3014_v8 = vld [vmem:[%s2971_s21 + $0x168] sm:$0xff]  ;;  %s2520_s22 = sshll.u32 %s4924_s24, 3  ;;  %s2738_s24 = sshll.u32 %s2940_s9, 4 }
  0x1a   : > { %v2977_v1 = vld [vmem:[%s2971_s21 + $0x1f8] sm:$0xff]  ;;  %2557 = vmatpush.xpose.msk.msra.mxu2 %vm387_vm0, %v2974_v0  ;;  %v2997_v5 = vld [vmem:[%s2971_s21 + $0x1f0] sm:$0xff]  ;;  %v3017_v9 = vld [vmem:[%s2971_s21 + $0x1e8] sm:$0xff]  ;;  %s4487_s23 = scalar_lea.vmem %s4814_s7, %s2520_s22  ;;  %s2423_s26 = scalar_lea.hbm %s4815_s8, %s2738_s24 }
  0x1b   : > { %v2980_v2 = vld [vmem:[%s2971_s21 + $0x78] sm:$0xff]  ;;  %2575 = vmatpush.xpose.msk.msra.mxu3 %vm387_vm0, %v2977_v1  ;;  %v3000_v6 = vld [vmem:[%s2971_s21 + $0x70] sm:$0xff]  ;;  %v3020_v10 = vld [vmem:[%s2971_s21 + $0x68] sm:$0xff]  ;;  %s2427_s12 = sshll.u32 %s2423_s26, 4  ;;  %s2408_s17 = scalar_lea.sflag [#allocation3], %s305_s25  ;;  %s2428_s12 = int_to_ptr.hbm [resolvable:$true] %s2427_s12 }
  0x1c   : > { %v2987_v3 = vld [vmem:[%s2971_s21 + $0xf8] sm:$0xff]  ;;  %2521 = vmatpush.xpose.msk.msra.mxu0 %vm387_vm0, %v2980_v2  ;;  %v3003_v7 = vld [vmem:[%s2971_s21 + $0xf0] sm:$0xff]  ;;  %v3023_v11 = vld [vmem:[%s2971_s21 + $0xe8] sm:$0xff]  ;;  %s2824_s18 = sshra.s32 %s2428_s12, 4  ;;  %s2830_s24 = scalar_lea.hbm %s4815_s8, 32  ;;  %s2825_s18 = int_to_ptr.hbm [resolvable:$true] %s2824_s18 }
  0x1d   : > { %2539 = vmatpush.xpose.msk.msra.mxu1 %vm387_vm0, %v2987_v3  ;;  %v3034_v12 = vld [vmem:[%s2971_s21 + $0x160] sm:$0xff]  ;;  %v3054_v16 = vld [vmem:[%s2971_s21 + $0x158] sm:$0xff]  ;;  %v3074_v20 = vld [vmem:[%s2971_s21 + $0x150] sm:$0xff]  ;;  %s2826_s9 = scalar_lea.hbm %s2825_s18, 16  ;;  %p2831_p1 = scmp.lt.s32.totalorder %s2825_s18, %s4815_s8 }
  0x1e   : > { %2558 = vmatpush.xpose.msk.msra.mxu2 %vm387_vm0, %v2994_v4  ;;  %v3037_v13 = vld [vmem:[%s2971_s21 + $0x1e0] sm:$0xff]  ;;  %v3057_v17 = vld [vmem:[%s2971_s21 + $0x1d8] sm:$0xff]  ;;  %v3077_v21 = vld [vmem:[%s2971_s21 + $0x1d0] sm:$0xff]  ;;  %p2827_p12 = scmp.ne.s32.totalorder %s2825_s18, %s2826_s9  ;;  %p2832_p2 = scmp.lt.s32.totalorder %s2830_s24, %s2826_s9 }
  0x1f   : > { %2576 = vmatpush.xpose.msk.msra.mxu3 %vm387_vm0, %v2997_v5  ;;  %v3040_v14 = vld [vmem:[%s2971_s21 + $0x60] sm:$0xff]  ;;  %v3060_v18 = vld [vmem:[%s2971_s21 + $0x58] sm:$0xff]  ;;  %v3080_v22 = vld [vmem:[%s2971_s21 + $0x50] sm:$0xff] }
  0x20   : > { %2522 = vmatpush.xpose.msk.msra.mxu0 %vm387_vm0, %v3000_v6  ;;  %v3043_v15 = vld [vmem:[%s2971_s21 + $0xe0] sm:$0xff]  ;;  %v3063_v19 = vld [vmem:[%s2971_s21 + $0xd8] sm:$0xff]  ;;  %v3083_v23 = vld [vmem:[%s2971_s21 + $0xd0] sm:$0xff]  ;;  %p2828_p13 = pnand %p2827_p12, %p2957_p5  ;;  %p2833_p3 = por %p2832_p2, %p2831_p1 }
  0x21   : > { %2540 = vmatpush.xpose.msk.msra.mxu1 %vm387_vm0, %v3003_v7  ;;  %v3094_v24 = vld [vmem:[%s2971_s21 + $0x148] sm:$0xff]  ;;  %v3114_v28 = vld [vmem:[%s2971_s21 + $0x140] sm:$0xff]  ;;  %v3134_v32 = vld [vmem:[%s2971_s21 + $0x138] sm:$0xff] }
  0x22   : > { %2559 = vmatpush.xpose.msk.msra.mxu2 %vm387_vm0, %v3014_v8  ;;  %v3097_v25 = vld [vmem:[%s2971_s21 + $0x1c8] sm:$0xff]  ;;  %v3117_v29 = vld [vmem:[%s2971_s21 + $0x1c0] sm:$0xff]  ;;  %v3137_v33 = vld [vmem:[%s2971_s21 + $0x1b8] sm:$0xff]  ;;  %p2829_p0 = pneg %p2828_p13 }
  0x23   : > { %2577 = vmatpush.xpose.msk.msra.mxu3 %vm387_vm0, %v3017_v9  ;;  %v3100_v26 = vld [vmem:[%s2971_s21 + $0x48] sm:$0xff]  ;;  %v3120_v30 = vld [vmem:[%s2971_s21 + $0x40] sm:$0xff]  ;;  %v3140_v34 = vld [vmem:[%s2971_s21 + $0x38] sm:$0xff] }
  0x24   : > { %2523 = vmatpush.xpose.msk.msra.mxu0 %vm387_vm0, %v3020_v10  ;;  %v3103_v27 = vld [vmem:[%s2971_s21 + $0xc8] sm:$0xff]  ;;  %v3123_v31 = vld [vmem:[%s2971_s21 + $0xc0] sm:$0xff]  ;;  %v3143_v35 = vld [vmem:[%s2971_s21 + $0xb8] sm:$0xff]  ;;  %p2834_p4 = pnand %p2833_p3, %p2829_p0 }
  0x25   : > { %2541 = vmatpush.xpose.msk.msra.mxu1 %vm387_vm0, %v3023_v11  ;;  %v3154_v36 = vld [vmem:[%s2971_s21 + $0x130] sm:$0xff]  ;;  %v3174_v40 = vld [vmem:[%s2971_s21 + $0x128] sm:$0xff]  ;;  %v3194_v44 = vld [vmem:[%s2971_s21 + $0x120] sm:$0xff] }
  0x26   : > { %2560 = vmatpush.xpose.msk.msra.mxu2 %vm387_vm0, %v3034_v12  ;;  %v3157_v37 = vld [vmem:[%s2971_s21 + $0x1b0] sm:$0xff]  ;;  %v3177_v41 = vld [vmem:[%s2971_s21 + $0x1a8] sm:$0xff]  ;;  %4836 = vst [vmem:[#allocation6_spill] sm:$0xff] %v3194_v44  ;;  %v3197_v45 = vld [vmem:[%s2971_s21 + $0x1a0] sm:$0xff] }
  0x27   : > { %2578 = vmatpush.xpose.msk.msra.mxu3 %vm387_vm0, %v3037_v13  ;;  %v3160_v38 = vld [vmem:[%s2971_s21 + $0x30] sm:$0xff]  ;;  %4835 = vst [vmem:[#allocation5_spill] sm:$0xff] %v3177_v41  ;;  %v3180_v42 = vld [vmem:[%s2971_s21 + $0x28] sm:$0xff]  ;;  %v3200_v46 = vld [vmem:[%s2971_s21 + $0x20] sm:$0xff] }
  0x28   : > { %2524 = vmatpush.xpose.msk.msra.mxu0 %vm387_vm0, %v3040_v14  ;;  %v3163_v39 = vld [vmem:[%s2971_s21 + $0xb0] sm:$0xff]  ;;  %v3183_v43 = vld [vmem:[%s2971_s21 + $0xa8] sm:$0xff]  ;;  %4837 = vst [vmem:[#allocation7_spill] sm:$0xff] %v3197_v45  ;;  %v3203_v47 = vld [vmem:[%s2971_s21 + $0xa0] sm:$0xff] }
  0x29   : > { %2542 = vmatpush.xpose.msk.msra.mxu1 %vm387_vm0, %v3043_v15  ;;  %v3214_v48 = vld [vmem:[%s2971_s21 + $0x118] sm:$0xff]  ;;  %v3234_v52 = vld [vmem:[%s2971_s21 + $0x110] sm:$0xff]  ;;  %v3254_v56 = vld [vmem:[%s2971_s21 + $0x108] sm:$0xff] }
  0x2a   : > { %2561 = vmatpush.xpose.msk.msra.mxu2 %vm387_vm0, %v3054_v16  ;;  %4838 = vst [vmem:[#allocation8_spill] sm:$0xff] %v3214_v48  ;;  %v3217_v49 = vld [vmem:[%s2971_s21 + $0x198] sm:$0xff]  ;;  %v3237_v53 = vld [vmem:[%s2971_s21 + $0x190] sm:$0xff]  ;;  %v3257_v57 = vld [vmem:[%s2971_s21 + $0x188] sm:$0xff] }
  0x2b   : > { %2579 = vmatpush.xpose.msk.msra.mxu3 %vm387_vm0, %v3057_v17  ;;  %4839 = vst [vmem:[#allocation9_spill] sm:$0xff] %v3217_v49  ;;  %v3220_v50 = vld [vmem:[%s2971_s21 + $0x18] sm:$0xff]  ;;  %v3240_v54 = vld [vmem:[%s2971_s21 + $0x10] sm:$0xff]  ;;  %v3260_v58 = vld [vmem:[%s2971_s21 + $0x8] sm:$0xff] }
  0x2c   : > { %2525 = vmatpush.xpose.msk.msra.mxu0 %vm387_vm0, %v3060_v18  ;;  %v3223_v51 = vld [vmem:[%s2971_s21 + $0x98] sm:$0xff]  ;;  %4840 = vst [vmem:[#allocation10_spill] sm:$0xff] %v3234_v52  ;;  %v3243_v55 = vld [vmem:[%s2971_s21 + $0x90] sm:$0xff]  ;;  %v3263_v59 = vld [vmem:[%s2971_s21 + $0x88] sm:$0xff] }
  0x2d   : > { %2543 = vmatpush.xpose.msk.msra.mxu1 %vm387_vm0, %v3063_v19  ;;  %4841 = vst [vmem:[#allocation11_spill] sm:$0xff] %v3237_v53  ;;  %v3274_v60 = vld [vmem:[%s2971_s21 + $0x100] sm:$0xff] }
  0x2e   : > { %2562 = vmatpush.xpose.msk.msra.mxu2 %vm387_vm0, %v3074_v20  ;;  %4842 = vst [vmem:[#allocation12_spill] sm:$0xff] %v3240_v54  ;;  %v3277_v61 = vld [vmem:[%s2971_s21 + $0x180] sm:$0xff] }
  0x2f   : > { %2580 = vmatpush.xpose.msk.msra.mxu3 %vm387_vm0, %v3077_v21  ;;  %4843 = vst [vmem:[#allocation13_spill] sm:$0xff] %v3243_v55  ;;  %v3280_v62 = vld [vmem:[%s2971_s21] sm:$0xff] }
  0x30   : > { %2526 = vmatpush.xpose.msk.msra.mxu0 %vm387_vm0, %v3080_v22  ;;  %4844 = vst [vmem:[#allocation14_spill] sm:$0xff] %v3254_v56  ;;  %v3283_v63 = vld [vmem:[%s2971_s21 + $0x80] sm:$0xff] }
  0x31   : > { %2544 = vmatpush.xpose.msk.msra.mxu1 %vm387_vm0, %v3083_v23  ;;  %4845 = vst [vmem:[#allocation15_spill] sm:$0xff] %v3257_v57 }
  0x32   : > { %2563 = vmatpush.xpose.msk.msra.mxu2 %vm387_vm0, %v3094_v24  ;;  %4846 = vst [vmem:[#allocation16_spill] sm:$0xff] %v3260_v58 }
  0x33   : > { %2581 = vmatpush.xpose.msk.msra.mxu3 %vm387_vm0, %v3097_v25  ;;  %4847 = vst [vmem:[#allocation17_spill] sm:$0xff] %v3263_v59 }
  0x34   : > { %2527 = vmatpush.xpose.msk.msra.mxu0 %vm387_vm0, %v3100_v26  ;;  %4848 = vst [vmem:[#allocation18_spill] sm:$0xff] %v3274_v60 }
  0x35   : > { %2545 = vmatpush.xpose.msk.msra.mxu1 %vm387_vm0, %v3103_v27  ;;  %4849 = vst [vmem:[#allocation19_spill] sm:$0xff] %v3277_v61 }
  0x36   : > { %2564 = vmatpush.xpose.msk.msra.mxu2 %vm387_vm0, %v3114_v28  ;;  %4850 = vst [vmem:[#allocation20_spill] sm:$0xff] %v3280_v62 }
  0x37   : > { %2582 = vmatpush.xpose.msk.msra.mxu3 %vm387_vm0, %v3117_v29  ;;  %4851 = vst [vmem:[#allocation21_spill] sm:$0xff] %v3283_v63 }
  0x38   : > { %2528 = vmatpush.xpose.msk.msra.mxu0 %vm387_vm0, %v3120_v30 }
  0x39   : > { %2546 = vmatpush.xpose.msk.msra.mxu1 %vm387_vm0, %v3123_v31 }
  0x3a   : > { %2565 = vmatpush.xpose.msk.msra.mxu2 %vm387_vm0, %v3134_v32 }
  0x3b   : > { %2583 = vmatpush.xpose.msk.msra.mxu3 %vm387_vm0, %v3137_v33 }
  0x3c   : > { %2529 = vmatpush.xpose.msk.msra.mxu0 %vm387_vm0, %v3140_v34 }
  0x3d   : > { %2547 = vmatpush.xpose.msk.msra.mxu1 %vm387_vm0, %v3143_v35 }
  0x3e   : > { %2566 = vmatpush.xpose.msk.msra.mxu2 %vm387_vm0, %v3154_v36 }
  0x3f   : > { %2584 = vmatpush.xpose.msk.msra.mxu3 %vm387_vm0, %v3157_v37 }
  0x40   : > { %2530 = vmatpush.xpose.msk.msra.mxu0 %vm387_vm0, %v3160_v38 }
  0x41   : > { %2548 = vmatpush.xpose.msk.msra.mxu1 %vm387_vm0, %v3163_v39 }
  0x42   : > { %2567 = vmatpush.xpose.msk.msra.mxu2 %vm387_vm0, %v3174_v40 }
  0x43   : > { %2585 = vmatpush.xpose.msk.msra.mxu3 %vm387_vm0, %v3177_v41 }
  0x44   : > { %2531 = vmatpush.xpose.msk.msra.mxu0 %vm387_vm0, %v3180_v42 }
  0x45   : > { %2549 = vmatpush.xpose.msk.msra.mxu1 %vm387_vm0, %v3183_v43 }
  0x46   : > { %2568 = vmatpush.xpose.msk.msra.mxu2 %vm387_vm0, %v3194_v44 }
  0x47   : > { %2586 = vmatpush.xpose.msk.msra.mxu3 %vm387_vm0, %v3197_v45 }
  0x48   : > { %2532 = vmatpush.xpose.msk.msra.mxu0 %vm387_vm0, %v3200_v46 }
  0x49   : > { %2550 = vmatpush.xpose.msk.msra.mxu1 %vm387_vm0, %v3203_v47 }
  0x4a   : > { %2569 = vmatpush.xpose.msk.msra.mxu2 %vm387_vm0, %v3214_v48 }
  0x4b   : > { %2587 = vmatpush.xpose.msk.msra.mxu3 %vm387_vm0, %v3217_v49 }
  0x4c   : > { %2533 = vmatpush.xpose.msk.msra.mxu0 %vm387_vm0, %v3220_v50 }
  0x4d   : > { %2551 = vmatpush.xpose.msk.msra.mxu1 %vm387_vm0, %v3223_v51 }
  0x4e   : > { %2570 = vmatpush.xpose.msk.msra.mxu2 %vm387_vm0, %v3234_v52 }
  0x4f   : > { %2588 = vmatpush.xpose.msk.msra.mxu3 %vm387_vm0, %v3237_v53 }
  0x50   : > { %2534 = vmatpush.xpose.msk.msra.mxu0 %vm387_vm0, %v3240_v54 }
  0x51   : > { %2552 = vmatpush.xpose.msk.msra.mxu1 %vm387_vm0, %v3243_v55  ;;  %v830_v55 = vld [vmem:[%s4810_s3 + $0x128] sm:$0xff] }
  0x52   : > { %2571 = vmatpush.xpose.msk.msra.mxu2 %vm387_vm0, %v3254_v56 }
  0x53   : > { %2589 = vmatpush.xpose.msk.msra.mxu3 %vm387_vm0, %v3257_v57  ;;  %v385_v57 = vld [vmem:[%s4808_s1] sm:$0xff] }
  0x54   : > { %2535 = vmatpush.xpose.msk.msra.mxu0 %vm387_vm0, %v3260_v58 }
  0x55   : > { %2553 = vmatpush.xpose.msk.msra.mxu1 %vm387_vm0, %v3263_v59 }
  0x56   : > { %2572 = vmatpush.xpose.msk.msra.mxu2 %vm387_vm0, %v3274_v60 }
  0x57   : > { %2590 = vmatpush.xpose.msk.msra.mxu3 %vm387_vm0, %v3277_v61  ;;  %v386_v61 = vld [vmem:[%s4808_s1 + $0x8] sm:$0xff] }
  0x58   : > { %2536 = vmatpush.xpose.msk.msra.mxu0 %vm387_vm0, %v3280_v62 }
  0x59   : > { %2554 = vmatpush.xpose.msk.msra.mxu1 %vm387_vm0, %v3283_v63  ;;  %2573 = vmatmul.msk.f32.vlgmr.msra.gmra.mxu2 %vm387_vm0, %v385_v57 }
  0x5a   : > { %2591 = vmatmul.msk.f32.vlgmr.msra.gmra.mxu3 %vm387_vm0, %v385_v57 }
  0x5b   : > { %2537 = vmatmul.msk.f32.vlgmr.msra.gmra.mxu0 %vm387_vm0, %v385_v57 }
  0x5c   : > { %2555 = vmatmul.msk.f32.vlgmr.msra.gmra.mxu1 %vm387_vm0, %v385_v57 }
  0x61   : > { %2574 = vmatmul.msk.f32.gmra.mxu2 %vm387_vm0, %v386_v61 }
  0x62   : > { %2592 = vmatmul.msk.f32.gmra.mxu3 %vm387_vm0, %v386_v61 }
  0x63   : > { %2538 = vmatmul.msk.f32.gmra.mxu0 %vm387_vm0, %v386_v61 }
  0x64   : > { %2556 = vmatmul.msk.f32.gmra.mxu1 %vm387_vm0, %v386_v61  ;;  %v807_v61 = vld [vmem:[%s4810_s3 + $0x70] sm:$0xff] }
  0xd8   : > { %v603_v60 = vpop.f32.mrf.mxu0 }
  0xd9   : > { %v626_v56 = vpop.f32.mrf.mxu1  ;;  %2778 = vtanh.f32 %v603_v60 }
  0xda   : > { %2780 = vtanh.f32 %v626_v56  ;;  %v686_v56 = vld [vmem:[%s4809_s2] sm:$0xf] }
  0xdc   : > { %v649_v53 = vpop.f32.mrf.mxu2 }
  0xdd   : > { %v672_v63 = vpop.f32.mrf.mxu3 }
  0xdf   : > { %v2779_v62 = vpop.eup %2778 }
  0xe0   : > { %v606_v52 = vpop.f32.mrf.mxu0  ;;  %v2781_v59 = vpop.eup %2780 }
  0xe1   : > { %v629_v57 = vpop.f32.mrf.mxu1  ;;  %2782 = vtanh.f32 %v606_v52 }
  0xe2   : > { %2784 = vtanh.f32 %v629_v57  ;;  %v855_v57 = vld [vmem:[%s4810_s3 + $0x1f0] sm:$0xff] }
  0xe4   : > { %v652_v49 = vpop.f32.mrf.mxu2 }
  0xe5   : > { %v675_v48 = vpop.f32.mrf.mxu3  ;;  %2786 = vtanh.f32 %v652_v49 }
  0xe6   : > { %2788 = vtanh.f32 %v675_v48 }
  0xe7   : > { %v2783_v58 = vpop.eup %2782  ;;  %2790 = vtanh.f32 %v649_v53  ;;  %v824_v53 = vld [vmem:[%s4810_s3 + $0xf8] sm:$0xff] }
  0xe8   : > { %v2785_v45 = vpop.eup %2784  ;;  %705 = vmatpush.msrb.mxu0 %v2783_v58  ;;  %2792 = vtanh.f32 %v672_v63  ;;  %v840_v58 = vld [vmem:[%s4810_s3 + $0x178] sm:$0xff]  ;;  %v839_v63 = vld [vmem:[%s4810_s3 + $0x170] sm:$0xff] }
  0xe9   : > { %725 = vmatpush.msrb.mxu1 %v2785_v45  ;;  %v808_v45 = vld [vmem:[%s4810_s3 + $0x78] sm:$0xff] }
  0xea   : > { %706 = vmatpush.msrb.mxu0 %v2779_v62  ;;  %v823_v62 = vld [vmem:[%s4810_s3 + $0xf0] sm:$0xff] }
  0xeb   : > { %726 = vmatpush.msrb.mxu1 %v2781_v59  ;;  %2593 = vmatmul.msk.f32.vlgmr.msrb.gmra.mxu0 %vm687_vm1, %v686_v56  ;;  %v2787_v52 = vpop.eup %2786  ;;  %v856_v59 = vld [vmem:[%s4810_s3 + $0x1f8] sm:$0xff] }
  0xec   : > { %2594 = vmatmul.msk.f32.vlgmr.msrb.gmra.mxu1 %vm687_vm1, %v686_v56  ;;  %v2789_v60 = vpop.eup %2788  ;;  %745 = vmatpush.msrb.mxu2 %v2787_v52  ;;  %v822_v52 = vld [vmem:[%s4810_s3 + $0xe8] sm:$0xff] }
  0xed   : > { %v2791_v49 = vpop.eup %2790  ;;  %765 = vmatpush.msrb.mxu3 %v2789_v60  ;;  %857 = vmatpush.msra.mxu0 %v808_v45  ;;  %v838_v60 = vld [vmem:[%s4810_s3 + $0x168] sm:$0xff]  ;;  %v821_v45 = vld [vmem:[%s4810_s3 + $0xe0] sm:$0xff] }
  0xee   : > { %v2793_v48 = vpop.eup %2792  ;;  %746 = vmatpush.msrb.mxu2 %v2791_v49  ;;  %877 = vmatpush.msra.mxu1 %v824_v53  ;;  %v854_v49 = vld [vmem:[%s4810_s3 + $0x1e8] sm:$0xff]  ;;  %v837_v53 = vld [vmem:[%s4810_s3 + $0x160] sm:$0xff] }
  0xef   : > { %766 = vmatpush.msrb.mxu3 %v2793_v48  ;;  %2595 = vmatmul.msk.f32.vlgmr.msrb.gmra.mxu2 %vm687_vm1, %v686_v56  ;;  %v805_v48 = vld [vmem:[%s4810_s3 + $0x60] sm:$0xff] }
  0xf0   : > { %2596 = vmatmul.msk.f32.vlgmr.msrb.gmra.mxu3 %vm687_vm1, %v686_v56  ;;  %897 = vmatpush.msra.mxu2 %v840_v58  ;;  %v806_v56 = vld [vmem:[%s4810_s3 + $0x68] sm:$0xff]  ;;  %v853_v58 = vld [vmem:[%s4810_s3 + $0x1e0] sm:$0xff] }
  0xf1   : > { %917 = vmatpush.msra.mxu3 %v856_v59  ;;  %858 = vmatpush.msra.mxu0 %v807_v61  ;;  %v804_v59 = vld [vmem:[%s4810_s3 + $0x58] sm:$0xff] }
  0xf2   : > { %878 = vmatpush.msra.mxu1 %v823_v62  ;;  %898 = vmatpush.msra.mxu2 %v839_v63  ;;  %v820_v61 = vld [vmem:[%s4810_s3 + $0xd8] sm:$0xff] }
  0xf3   : > { %918 = vmatpush.msra.mxu3 %v855_v57  ;;  %859 = vmatpush.msra.mxu0 %v806_v56  ;;  %v836_v62 = vld [vmem:[%s4810_s3 + $0x158] sm:$0xff]  ;;  %v803_v57 = vld [vmem:[%s4810_s3 + $0x50] sm:$0xff] }
  0xf4   : > { %879 = vmatpush.msra.mxu1 %v822_v52  ;;  %899 = vmatpush.msra.mxu2 %v838_v60  ;;  %v852_v63 = vld [vmem:[%s4810_s3 + $0x1d8] sm:$0xff]  ;;  %v819_v56 = vld [vmem:[%s4810_s3 + $0xd0] sm:$0xff] }
  0xf5   : > { %919 = vmatpush.msra.mxu3 %v854_v49  ;;  %860 = vmatpush.msra.mxu0 %v805_v48  ;;  %v835_v52 = vld [vmem:[%s4810_s3 + $0x150] sm:$0xff]  ;;  %v802_v49 = vld [vmem:[%s4810_s3 + $0x48] sm:$0xff] }
  0xf6   : > { %880 = vmatpush.msra.mxu1 %v821_v45  ;;  %900 = vmatpush.msra.mxu2 %v837_v53  ;;  %v851_v60 = vld [vmem:[%s4810_s3 + $0x1d0] sm:$0xff]  ;;  %v818_v48 = vld [vmem:[%s4810_s3 + $0xc8] sm:$0xff] }
  0xf7   : > { %920 = vmatpush.msra.mxu3 %v853_v58  ;;  %861 = vmatpush.msra.mxu0 %v804_v59  ;;  %v834_v45 = vld [vmem:[%s4810_s3 + $0x148] sm:$0xff]  ;;  %v801_v58 = vld [vmem:[%s4810_s3 + $0x40] sm:$0xff] }
  0xf8   : > { %881 = vmatpush.msra.mxu1 %v820_v61  ;;  %901 = vmatpush.msra.mxu2 %v836_v62  ;;  %v850_v53 = vld [vmem:[%s4810_s3 + $0x1c8] sm:$0xff]  ;;  %v817_v59 = vld [vmem:[%s4810_s3 + $0xc0] sm:$0xff] }
  0xf9   : > { %921 = vmatpush.msra.mxu3 %v852_v63  ;;  %862 = vmatpush.msra.mxu0 %v803_v57  ;;  %v833_v61 = vld [vmem:[%s4810_s3 + $0x140] sm:$0xff]  ;;  %v800_v63 = vld [vmem:[%s4810_s3 + $0x38] sm:$0xff] }
  0xfa   : > { %882 = vmatpush.msra.mxu1 %v819_v56  ;;  %902 = vmatpush.msra.mxu2 %v835_v52  ;;  %v849_v62 = vld [vmem:[%s4810_s3 + $0x1c0] sm:$0xff]  ;;  %v816_v57 = vld [vmem:[%s4810_s3 + $0xb8] sm:$0xff] }
  0xfb   : > { %922 = vmatpush.msra.mxu3 %v851_v60  ;;  %863 = vmatpush.msra.mxu0 %v802_v49  ;;  %v832_v56 = vld [vmem:[%s4810_s3 + $0x138] sm:$0xff]  ;;  %v799_v60 = vld [vmem:[%s4810_s3 + $0x30] sm:$0xff] }
  0xfc   : > { %883 = vmatpush.msra.mxu1 %v818_v48  ;;  %903 = vmatpush.msra.mxu2 %v834_v45  ;;  %v848_v52 = vld [vmem:[%s4810_s3 + $0x1b8] sm:$0xff]  ;;  %v815_v49 = vld [vmem:[%s4810_s3 + $0xb0] sm:$0xff] }
  0xfd   : > { %923 = vmatpush.msra.mxu3 %v850_v53  ;;  %864 = vmatpush.msra.mxu0 %v801_v58  ;;  %v831_v48 = vld [vmem:[%s4810_s3 + $0x130] sm:$0xff] }
  0xfe   : > { %884 = vmatpush.msra.mxu1 %v817_v59  ;;  %904 = vmatpush.msra.mxu2 %v833_v61  ;;  %v847_v45 = vld [vmem:[%s4810_s3 + $0x1b0] sm:$0xff] }
  0xff   : > { %924 = vmatpush.msra.mxu3 %v849_v62  ;;  %865 = vmatpush.msra.mxu0 %v800_v63 }
 0x100   : > { %885 = vmatpush.msra.mxu1 %v816_v57  ;;  %905 = vmatpush.msra.mxu2 %v832_v56 }
 0x101   : > { %925 = vmatpush.msra.mxu3 %v848_v52  ;;  %866 = vmatpush.msra.mxu0 %v799_v60 }
 0x102   : > { %886 = vmatpush.msra.mxu1 %v815_v49  ;;  %906 = vmatpush.msra.mxu2 %v831_v48  ;;  %v798_v48 = vld [vmem:[%s4810_s3 + $0x28] sm:$0xff] }
 0x103   : > { %926 = vmatpush.msra.mxu3 %v847_v45  ;;  %v814_v45 = vld [vmem:[%s4810_s3 + $0xa8] sm:$0xff]  ;;  %867 = vmatpush.msra.mxu0 %v798_v48  ;;  %v844_v48 = vld [vmem:[%s4810_s3 + $0x198] sm:$0xff] }
 0x104   : > { %887 = vmatpush.msra.mxu1 %v814_v45  ;;  %907 = vmatpush.msra.mxu2 %v830_v55  ;;  %v796_v55 = vld [vmem:[%s4810_s3 + $0x18] sm:$0xff]  ;;  %v795_v45 = vld [vmem:[%s4810_s3 + $0x10] sm:$0xff] }
 0x168   : > { %v3430_v53 = vpop.f32.mrf.mxu0 }
 0x169   : > { %v3432_v58 = vpop.f32.mrf.mxu1  ;;  %v772_v59 = vsel %vm771_vm2, %v3430_v53, -inf }
 0x16a   : > { %v773_v61 = vsel %vm771_vm2, %v3432_v58, -inf }
 0x16b   : > { %v776_v56 = vmax.f32 %v772_v59, %v773_v61  ;;  %v846_v59 = vld [vmem:[%s4810_s3 + $0x1a8] sm:$0xff]  ;;  %v797_v61 = vld [vmem:[%s4810_s3 + $0x20] sm:$0xff] }
 0x16c   : > { %927 = vmatpush.msra.mxu3 %v846_v59  ;;  %868 = vmatpush.msra.mxu0 %v797_v61  ;;  %v811_v59 = vld [vmem:[%s4810_s3 + $0x90] sm:$0xff] }
 0x16d   : > { %v827_v61 = vld [vmem:[%s4810_s3 + $0x110] sm:$0xff] }
 0x16e   : > { %869 = vmatpush.msra.mxu0 %v796_v55  ;;  %v826_v55 = vld [vmem:[%s4810_s3 + $0x108] sm:$0xff] }
 0x170   : > { %870 = vmatpush.msra.mxu0 %v795_v45  ;;  %v825_v45 = vld [vmem:[%s4810_s3 + $0x100] sm:$0xff] }
 0x172   : > { %v3438_v62 = vpop.f32.mrf.mxu2 }
 0x173   : > { %v3440_v63 = vpop.f32.mrf.mxu3  ;;  %v774_v57 = vsel %vm771_vm2, %v3438_v62, -inf }
 0x174   : > { %v775_v52 = vsel %vm771_vm2, %v3440_v63, -inf }
 0x175   : > { %v777_v60 = vmax.f32 %v774_v57, %v775_v52  ;;  %v813_v57 = vld [vmem:[%s4810_s3 + $0xa0] sm:$0xff] }
 0x176   : > { %888 = vmatpush.msra.mxu1 %v813_v57  ;;  %v845_v52 = vld [vmem:[%s4810_s3 + $0x1a0] sm:$0xff]  ;;  %v843_v57 = vld [vmem:[%s4810_s3 + $0x190] sm:$0xff] }
 0x177   : > { %v778_v49 = vmax.f32 %v776_v56, %v777_v60  ;;  %v829_v56 = vld [vmem:[%s4810_s3 + $0x120] sm:$0xff]  ;;  %928 = vmatpush.msra.mxu3 %v845_v52  ;;  %v812_v60 = vld [vmem:[%s4810_s3 + $0x98] sm:$0xff]  ;;  %v810_v52 = vld [vmem:[%s4810_s3 + $0x88] sm:$0xff] }
 0x178   : > { %908 = vmatpush.msra.mxu2 %v829_v56  ;;  %889 = vmatpush.msra.mxu1 %v812_v60  ;;  %v794_v56 = vld [vmem:[%s4810_s3 + $0x8] sm:$0xff] }
 0x179   : > { %779 = vmax.xlane.f32.xlu0 %v778_v49  ;;  %v828_v49 = vld [vmem:[%s4810_s3 + $0x118] sm:$0xff]  ;;  %929 = vmatpush.msra.mxu3 %v844_v48  ;;  %v842_v60 = vld [vmem:[%s4810_s3 + $0x188] sm:$0xff]  ;;  %v809_v48 = vld [vmem:[%s4810_s3 + $0x80] sm:$0xff] }
 0x17a   : > { %909 = vmatpush.msra.mxu2 %v828_v49  ;;  %890 = vmatpush.msra.mxu1 %v811_v59  ;;  %v793_v49 = vld [vmem:[%s4810_s3] sm:$0xff] }
 0x17b   : > { %930 = vmatpush.msra.mxu3 %v843_v57  ;;  %871 = vmatpush.msra.mxu0 %v794_v56  ;;  %v841_v59 = vld [vmem:[%s4810_s3 + $0x180] sm:$0xff]  ;;  %v966_v57 = vld [vmem:[%s4811_s4 + $0xe8] sm:$0xff]  ;;  %v967_v56 = vld [vmem:[%s4811_s4 + $0xf0] sm:$0xff] }
 0x17c   : > { %910 = vmatpush.msra.mxu2 %v827_v61  ;;  %891 = vmatpush.msra.mxu1 %v810_v52  ;;  %v965_v61 = vld [vmem:[%s4811_s4 + $0xe0] sm:$0xff]  ;;  %v968_v52 = vld [vmem:[%s4811_s4 + $0xf8] sm:$0xff] }
 0x17d   : > { %931 = vmatpush.msra.mxu3 %v842_v60  ;;  %872 = vmatpush.msra.mxu0 %v793_v49  ;;  %v962_v60 = vld [vmem:[%s4811_s4 + $0xc8] sm:$0xff]  ;;  %v963_v49 = vld [vmem:[%s4811_s4 + $0xd0] sm:$0xff] }
 0x17e   : > { %911 = vmatpush.msra.mxu2 %v826_v55  ;;  %892 = vmatpush.msra.mxu1 %v809_v48  ;;  %v961_v55 = vld [vmem:[%s4811_s4 + $0xc0] sm:$0xff]  ;;  %v964_v48 = vld [vmem:[%s4811_s4 + $0xd8] sm:$0xff] }
 0x17f   : > { %932 = vmatpush.msra.mxu3 %v841_v59  ;;  %981 = vmatpush.msrb.mxu0 %v965_v61 }
 0x180   : > { %912 = vmatpush.msra.mxu2 %v825_v45  ;;  %1001 = vmatpush.msrb.mxu1 %v966_v57 }
 0x181   : > { %1041 = vmatpush.msrb.mxu3 %v968_v52  ;;  %982 = vmatpush.msrb.mxu0 %v961_v55 }
 0x182   : > { %1021 = vmatpush.msrb.mxu2 %v967_v56  ;;  %1002 = vmatpush.msrb.mxu1 %v962_v60 }
 0x183   : > { %1042 = vmatpush.msrb.mxu3 %v964_v48  ;;  %v955_v48 = vld [vmem:[%s4811_s4 + $0x90] sm:$0xff] }
 0x184   : > { %1022 = vmatpush.msrb.mxu2 %v963_v49  ;;  %v954_v49 = vld [vmem:[%s4811_s4 + $0x88] sm:$0xff] }
 0x1ec   : > { %v780_v45 = vpop.xlane.xlu0 %779 }
 0x1ed   : > { %v781_v59 = vsub.f32 %v3430_v53, %v780_v45  ;;  %v782_v61 = vsub.f32 %v3432_v58, %v780_v45  ;;  %v783_v57 = vsub.f32 %v3438_v62, %v780_v45  ;;  %v784_v56 = vsub.f32 %v3440_v63, %v780_v45  ;;  %v960_v62 = vld [vmem:[%s4811_s4 + $0xb8] sm:$0xff]  ;;  %v953_v63 = vld [vmem:[%s4811_s4 + $0x80] sm:$0xff] }
 0x1ee   : > { %1043 = vmatpush.msrb.mxu3 %v960_v62  ;;  %v956_v45 = vld [vmem:[%s4811_s4 + $0x98] sm:$0xff]  ;;  %v941_v62 = vld [vmem:[%s4811_s4 + $0x20] sm:$0xff] }
 0x1ef   : > { %v785_v52 = vmul.f32 1.442695, %v781_v59  ;;  %v787_v44 = vmul.f32 1.442695, %v782_v61  ;;  %v789_v54 = vmul.f32 1.442695, %v783_v57 }
 0x1f0   : > { %v791_v41 = vmul.f32 1.442695, %v784_v56  ;;  %v949_v59 = vld [vmem:[%s4811_s4 + $0x60] sm:$0xff]  ;;  %v950_v61 = vld [vmem:[%s4811_s4 + $0x68] sm:$0xff]  ;;  %v951_v57 = vld [vmem:[%s4811_s4 + $0x70] sm:$0xff]  ;;  %1044 = vmatpush.msrb.mxu3 %v956_v45 }
 0x1f1   : > { %2794 = vpow2.f32 %v785_v52  ;;  %v952_v56 = vld [vmem:[%s4811_s4 + $0x78] sm:$0xff]  ;;  %v945_v52 = vld [vmem:[%s4811_s4 + $0x40] sm:$0xff] }
 0x1f2   : > { %2796 = vpow2.f32 %v787_v44  ;;  %v958_v44 = vld [vmem:[%s4811_s4 + $0xa8] sm:$0xff]  ;;  %1045 = vmatpush.msrb.mxu3 %v952_v56  ;;  %v937_v45 = vld [vmem:[%s4811_s4] sm:$0xff] }
 0x1f3   : > { %2798 = vpow2.f32 %v789_v54  ;;  %v959_v54 = vld [vmem:[%s4811_s4 + $0xb0] sm:$0xff]  ;;  %1003 = vmatpush.msrb.mxu1 %v958_v44 }
 0x1f4   : > { %2800 = vpow2.f32 %v791_v41  ;;  %v957_v41 = vld [vmem:[%s4811_s4 + $0xa0] sm:$0xff]  ;;  %1023 = vmatpush.msrb.mxu2 %v959_v54  ;;  %v947_v44 = vld [vmem:[%s4811_s4 + $0x50] sm:$0xff]  ;;  %v948_v54 = vld [vmem:[%s4811_s4 + $0x58] sm:$0xff] }
 0x1f5   : > { %983 = vmatpush.msrb.mxu0 %v957_v41  ;;  %1004 = vmatpush.msrb.mxu1 %v954_v49  ;;  %v946_v41 = vld [vmem:[%s4811_s4 + $0x48] sm:$0xff]  ;;  %v943_v49 = vld [vmem:[%s4811_s4 + $0x30] sm:$0xff] }
 0x1f6   : > { %1024 = vmatpush.msrb.mxu2 %v955_v48  ;;  %1046 = vmatpush.msrb.mxu3 %v948_v54  ;;  %v944_v48 = vld [vmem:[%s4811_s4 + $0x38] sm:$0xff] }
 0x1f7   : > { %v3546_v55 = vpop.eup %2794  ;;  %984 = vmatpush.msrb.mxu0 %v953_v63  ;;  %1005 = vmatpush.msrb.mxu1 %v950_v61  ;;  %v942_v63 = vld [vmem:[%s4811_s4 + $0x28] sm:$0xff]  ;;  %v939_v61 = vld [vmem:[%s4811_s4 + $0x10] sm:$0xff] }
 0x1f8   : > { %v3548_v60 = vpop.eup %2796  ;;  %873 = vmatmul.f32.vlgmr.msra.gmra.mxu0 %v3546_v55  ;;  %1025 = vmatpush.msrb.mxu2 %v951_v57  ;;  %v940_v57 = vld [vmem:[%s4811_s4 + $0x18] sm:$0xff] }
 0x1f9   : > { %v3551_v53 = vpop.eup %2798  ;;  %893 = vmatmul.f32.vlgmr.msra.gmra.mxu1 %v3548_v60  ;;  %985 = vmatpush.msrb.mxu0 %v949_v59  ;;  %v938_v59 = vld [vmem:[%s4811_s4 + $0x8] sm:$0xff] }
 0x1fa   : > { %v3554_v58 = vpop.eup %2800  ;;  %913 = vmatmul.f32.vlgmr.msra.gmra.mxu2 %v3551_v53  ;;  %1006 = vmatpush.msrb.mxu1 %v946_v41 }
 0x1fb   : > { %933 = vmatmul.f32.vlgmr.msra.gmra.mxu3 %v3554_v58  ;;  %986 = vmatpush.msrb.mxu0 %v945_v52 }
 0x1fc   : > { %1026 = vmatpush.msrb.mxu2 %v947_v44  ;;  %1007 = vmatpush.msrb.mxu1 %v942_v63 }
 0x1fd   : > { %987 = vmatpush.msrb.mxu0 %v941_v62  ;;  %1047 = vmatpush.msrb.mxu3 %v944_v48 }
 0x1fe   : > { %1027 = vmatpush.msrb.mxu2 %v943_v49  ;;  %1008 = vmatpush.msrb.mxu1 %v938_v59 }
 0x1ff   : > { %988 = vmatpush.msrb.mxu0 %v937_v45  ;;  %1048 = vmatpush.msrb.mxu3 %v940_v57 }
 0x200   : > { %1028 = vmatpush.msrb.mxu2 %v939_v61 }
 0x275   : > { %v874_v56 = vpop.f32.mrf.mxu0 }
 0x276   : > { %v894_v52 = vpop.f32.mrf.mxu1 }
 0x277   : > { %v895_v41 = vadd.f32 %v894_v52, %v874_v56  ;;  %v1073_v52 = vld [vmem:[%s4812_s5] sm:$0xff] }
 0x27d   : > { %v914_v44 = vpop.f32.mrf.mxu2 }
 0x27e   : > { %v915_v54 = vadd.f32 %v914_v44, %v895_v41  ;;  %v934_v62 = vpop.f32.mrf.mxu3 }
 0x280   : > { %v935_v63 = vadd.f32 %v934_v62, %v915_v54 }
 0x282   : > { %2597 = vmatmul.msk.f32.vlgmr.msrb.gmra.mxu0 %vm969_vm3, %v935_v63  ;;  %2598 = vmatmul.msk.f32.vlgmr.msrb.gmra.mxu1 %vm969_vm3, %v935_v63 }
 0x283   : > { %2599 = vmatmul.msk.f32.vlgmr.msrb.gmra.mxu2 %vm969_vm3, %v935_v63  ;;  %2600 = vmatmul.msk.f32.vlgmr.msrb.gmra.mxu3 %vm969_vm3, %v935_v63 }
 0x2ff   : > { %v990_v49 = vpop.f32.mrf.mxu0  ;;  %v1010_v48 = vpop.f32.mrf.mxu1 }
 0x300   : > { %2802 = vrcp.f32 %v990_v49 }
 0x301   : > { %2804 = vrcp.f32 %v1010_v48 }
 0x306   : > { %v2803_v45 = vpop.eup %2802  ;;  %v1030_v59 = vpop.f32.mrf.mxu2 }
 0x307   : > { %v1050_v61 = vpop.f32.mrf.mxu3  ;;  %v2805_v57 = vpop.eup %2804  ;;  %v1057_v56 = vmul.f32 %v2803_v45, %v3546_v55  ;;  %2806 = vrcp.f32 %v1030_v59 }
 0x308   : > { %v1058_v41 = vmul.f32 %v2805_v57, %v3548_v60  ;;  %2808 = vrcp.f32 %v1050_v61  ;;  %v1093_v61 = vld [vmem:[%s4812_s5 + $0xa0] sm:$0xff] }
 0x309   : > { %2601 = vmatpush.msk.msra.mxu0 %vm771_vm2, %v1057_v56 }
 0x30a   : > { %v1065_v44 = vrot.slane %v1058_v41, 4  ;;  %2634 = vmatpush.msk.msra.mxu1 %vm771_vm2, %v1058_v41  ;;  %2602 = vmatmul.msk.f32.vlgmr.msra.gmra.mxu0 %vm1105_vm4, %v1073_v52 }
 0x30b   : > { %2635 = vmatmul.msk.f32.vlgmr.msra.gmra.mxu1 %vm1105_vm4, %v1073_v52  ;;  %1918 = vmatpush.msrb.mxu0 %v2980_v2  ;;  %v1074_v2 = vld [vmem:[%s4812_s5 + $0x8] sm:$0xff] }
 0x30c   : > { %2031 = vmatpush.msrb.mxu1 %v2987_v3  ;;  %v1067_v55 = vsel %vm771_vm2, %v1057_v56, %v1065_v44  ;;  %v1094_v44 = vld [vmem:[%s4812_s5 + $0xa8] sm:$0xff] }
 0x30d   : > { %v2807_v54 = vpop.eup %2806  ;;  %1919 = vmatpush.msrb.mxu0 %v3000_v6  ;;  %1071 = vst [vmem:[%s3646_s13] sm:$0xff] %v1067_v55 }
 0x30e   : > { %v2809_v60 = vpop.eup %2808  ;;  %v1059_v62 = vmul.f32 %v2807_v54, %v3551_v53  ;;  %2032 = vmatpush.msrb.mxu1 %v3003_v7  ;;  %v1075_v7 = vld [vmem:[%s4812_s5 + $0x10] sm:$0xff] }
 0x30f   : > { %v1060_v63 = vmul.f32 %v2809_v60, %v3554_v58  ;;  %1920 = vmatpush.msrb.mxu0 %v3020_v10  ;;  %v4855_v10 = vld [vmem:[#allocation13_spill] sm:$0xff]  ;;  %v1092_v58 = vld [vmem:[%s4812_s5 + $0x98] sm:$0xff] }
 0x310   : > { %2667 = vmatpush.msk.msra.mxu2 %vm771_vm2, %v1059_v62  ;;  %2033 = vmatpush.msrb.mxu1 %v3023_v11  ;;  %v4856_v11 = vld [vmem:[#allocation7_spill] sm:$0xff] }
 0x311   : > { %v1066_v3 = vrot.slane %v1060_v63, 4  ;;  %2700 = vmatpush.msk.msra.mxu3 %vm771_vm2, %v1060_v63  ;;  %2668 = vmatmul.msk.f32.vlgmr.msra.gmra.mxu2 %vm1105_vm4, %v1073_v52  ;;  %v1095_v63 = vld [vmem:[%s4812_s5 + $0xb0] sm:$0xff] }
 0x312   : > { %2701 = vmatmul.msk.f32.vlgmr.msra.gmra.mxu3 %vm1105_vm4, %v1073_v52  ;;  %2603 = vmatmul.msk.f32.gmra.mxu0 %vm1105_vm4, %v1074_v2 }
 0x313   : > { %2636 = vmatmul.msk.f32.gmra.mxu1 %vm1105_vm4, %v1074_v2  ;;  %2144 = vmatpush.msrb.mxu2 %v2974_v0  ;;  %v1068_v6 = vsel %vm771_vm2, %v1059_v62, %v1066_v3  ;;  %v1076_v0 = vld [vmem:[%s4812_s5 + $0x18] sm:$0xff] }
 0x314   : > { %2257 = vmatpush.msrb.mxu3 %v2977_v1  ;;  %1921 = vmatpush.msrb.mxu0 %v3040_v14  ;;  %1072 = vst [vmem:[%s3646_s13 + $0x8] sm:$0xff] %v1068_v6  ;;  %v1077_v1 = vld [vmem:[%s4812_s5 + $0x20] sm:$0xff]  ;;  %v4859_v14 = vld [vmem:[#allocation8_spill] sm:$0xff] }
 0x315   : > { %2145 = vmatpush.msrb.mxu2 %v2994_v4  ;;  %2034 = vmatpush.msrb.mxu1 %v3043_v15  ;;  %v4852_v4 = vld [vmem:[#allocation5_spill] sm:$0xff] }
 0x316   : > { %2258 = vmatpush.msrb.mxu3 %v2997_v5  ;;  %1922 = vmatpush.msrb.mxu0 %v3060_v18  ;;  %v4853_v5 = vld [vmem:[#allocation12_spill] sm:$0xff]  ;;  %v4860_v15 = vld [vmem:[#allocation9_spill] sm:$0xff] }
 0x317   : > { %2146 = vmatpush.msrb.mxu2 %v3014_v8  ;;  %2035 = vmatpush.msrb.mxu1 %v3063_v19  ;;  %v1078_v8 = vld [vmem:[%s4812_s5 + $0x28] sm:$0xff]  ;;  %v4863_v18 = vld [vmem:[#allocation21_spill] sm:$0xff]  ;;  %v4864_v19 = vld [vmem:[#allocation11_spill] sm:$0xff] }
 0x318   : > { %2259 = vmatpush.msrb.mxu3 %v3017_v9  ;;  %1923 = vmatpush.msrb.mxu0 %v3080_v22  ;;  %v4854_v9 = vld [vmem:[#allocation6_spill] sm:$0xff]  ;;  %v4866_v22 = vld [vmem:[#allocation15_spill] sm:$0xff] }
 0x319   : > { %2669 = vmatmul.msk.f32.gmra.mxu2 %vm1105_vm4, %v1074_v2  ;;  %2036 = vmatpush.msrb.mxu1 %v3083_v23  ;;  %v4867_v23 = vld [vmem:[#allocation18_spill] sm:$0xff] }
 0x31a   : > { %2702 = vmatmul.msk.f32.gmra.mxu3 %vm1105_vm4, %v1074_v2  ;;  %2604 = vmatmul.msk.f32.gmra.mxu0 %vm1105_vm4, %v1075_v7 }
 0x31b   : > { %2637 = vmatmul.msk.f32.gmra.mxu1 %vm1105_vm4, %v1075_v7  ;;  %2147 = vmatpush.msrb.mxu2 %v3034_v12  ;;  %v4857_v12 = vld [vmem:[#allocation16_spill] sm:$0xff] }
 0x31c   : > { %2260 = vmatpush.msrb.mxu3 %v3037_v13  ;;  %1924 = vmatpush.msrb.mxu0 %v3100_v26  ;;  %v4858_v13 = vld [vmem:[#allocation17_spill] sm:$0xff] }
 0x31d   : > { %2148 = vmatpush.msrb.mxu2 %v3054_v16  ;;  %2037 = vmatpush.msrb.mxu1 %v3103_v27  ;;  %v4861_v16 = vld [vmem:[#allocation20_spill] sm:$0xff]  ;;  %v1081_v26 = vld [vmem:[%s4812_s5 + $0x40] sm:$0xff]  ;;  %v1082_v27 = vld [vmem:[%s4812_s5 + $0x48] sm:$0xff] }
 0x31e   : > { %2261 = vmatpush.msrb.mxu3 %v3057_v17  ;;  %1925 = vmatpush.msrb.mxu0 %v3120_v30  ;;  %v4862_v17 = vld [vmem:[#allocation10_spill] sm:$0xff]  ;;  %v1085_v30 = vld [vmem:[%s4812_s5 + $0x60] sm:$0xff] }
 0x31f   : > { %2149 = vmatpush.msrb.mxu2 %v3074_v20  ;;  %2038 = vmatpush.msrb.mxu1 %v3123_v31  ;;  %v1079_v20 = vld [vmem:[%s4812_s5 + $0x30] sm:$0xff]  ;;  %v1086_v31 = vld [vmem:[%s4812_s5 + $0x68] sm:$0xff] }
 0x320   : > { %2262 = vmatpush.msrb.mxu3 %v3077_v21  ;;  %1926 = vmatpush.msrb.mxu0 %v3140_v34  ;;  %v4865_v21 = vld [vmem:[#allocation14_spill] sm:$0xff] }
 0x321   : > { %2670 = vmatmul.msk.f32.gmra.mxu2 %vm1105_vm4, %v1075_v7  ;;  %2039 = vmatpush.msrb.mxu1 %v3143_v35  ;;  %v1089_v35 = vld [vmem:[%s4812_s5 + $0x80] sm:$0xff] }
 0x322   : > { %2703 = vmatmul.msk.f32.gmra.mxu3 %vm1105_vm4, %v1075_v7  ;;  %2605 = vmatmul.msk.f32.gmra.mxu0 %vm1105_vm4, %v1076_v0 }
 0x323   : > { %2638 = vmatmul.msk.f32.gmra.mxu1 %vm1105_vm4, %v1076_v0  ;;  %2150 = vmatpush.msrb.mxu2 %v3094_v24  ;;  %v4868_v24 = vld [vmem:[#allocation19_spill] sm:$0xff] }
 0x324   : > { %2263 = vmatpush.msrb.mxu3 %v3097_v25  ;;  %1927 = vmatpush.msrb.mxu0 %v3160_v38  ;;  %v1080_v25 = vld [vmem:[%s4812_s5 + $0x38] sm:$0xff]  ;;  %v1090_v38 = vld [vmem:[%s4812_s5 + $0x88] sm:$0xff] }
 0x325   : > { %2151 = vmatpush.msrb.mxu2 %v3114_v28  ;;  %2040 = vmatpush.msrb.mxu1 %v3163_v39  ;;  %v1083_v28 = vld [vmem:[%s4812_s5 + $0x50] sm:$0xff] }
 0x326   : > { %2264 = vmatpush.msrb.mxu3 %v3117_v29  ;;  %1928 = vmatpush.msrb.mxu0 %v3180_v42  ;;  %v1084_v29 = vld [vmem:[%s4812_s5 + $0x58] sm:$0xff] }
 0x327   : > { %2152 = vmatpush.msrb.mxu2 %v3134_v32  ;;  %2041 = vmatpush.msrb.mxu1 %v3183_v43  ;;  %v1087_v32 = vld [vmem:[%s4812_s5 + $0x70] sm:$0xff] }
 0x328   : > { %2265 = vmatpush.msrb.mxu3 %v3137_v33  ;;  %1929 = vmatpush.msrb.mxu0 %v3200_v46  ;;  %v1088_v33 = vld [vmem:[%s4812_s5 + $0x78] sm:$0xff]  ;;  %v1091_v46 = vld [vmem:[%s4812_s5 + $0x90] sm:$0xff] }
 0x329   : > { %2671 = vmatmul.msk.f32.gmra.mxu2 %vm1105_vm4, %v1076_v0  ;;  %2042 = vmatpush.msrb.mxu1 %v3203_v47 }
 0x32a   : > { %2704 = vmatmul.msk.f32.gmra.mxu3 %vm1105_vm4, %v1076_v0  ;;  %2606 = vmatmul.msk.f32.gmra.mxu0 %vm1105_vm4, %v1077_v1  ;;  %v1096_v0 = vld [vmem:[%s4812_s5 + $0xb8] sm:$0xff] }
 0x32b   : > { %2639 = vmatmul.msk.f32.gmra.mxu1 %vm1105_vm4, %v1077_v1  ;;  %2153 = vmatpush.msrb.mxu2 %v3154_v36 }
 0x32c   : > { %2266 = vmatpush.msrb.mxu3 %v3157_v37  ;;  %1930 = vmatpush.msrb.mxu0 %v3220_v50 }
 0x32d   : > { %2154 = vmatpush.msrb.mxu2 %v3174_v40  ;;  %2043 = vmatpush.msrb.mxu1 %v3223_v51 }
 0x32e   : > { %2267 = vmatpush.msrb.mxu3 %v4852_v4  ;;  %1931 = vmatpush.msrb.mxu0 %v4853_v5 }
 0x32f   : > { %2155 = vmatpush.msrb.mxu2 %v4854_v9  ;;  %2044 = vmatpush.msrb.mxu1 %v4855_v10  ;;  %v1097_v9 = vld [vmem:[%s4812_s5 + $0xc0] sm:$0xff] }
 0x330   : > { %2268 = vmatpush.msrb.mxu3 %v4856_v11  ;;  %1932 = vmatpush.msrb.mxu0 %v4857_v12 }
 0x331   : > { %2672 = vmatmul.msk.f32.gmra.mxu2 %vm1105_vm4, %v1077_v1  ;;  %2045 = vmatpush.msrb.mxu1 %v4858_v13 }
 0x332   : > { %2705 = vmatmul.msk.f32.gmra.mxu3 %vm1105_vm4, %v1077_v1  ;;  %2607 = vmatmul.msk.f32.gmra.mxu0 %vm1105_vm4, %v1078_v8 }
 0x333   : > { %2640 = vmatmul.msk.f32.gmra.mxu1 %vm1105_vm4, %v1078_v8  ;;  %2156 = vmatpush.msrb.mxu2 %v4859_v14  ;;  %v1098_v14 = vld [vmem:[%s4812_s5 + $0xc8] sm:$0xff] }
 0x334   : > { %2269 = vmatpush.msrb.mxu3 %v4860_v15  ;;  %1933 = vmatpush.msrb.mxu0 %v4861_v16 }
 0x335   : > { %2157 = vmatpush.msrb.mxu2 %v4862_v17  ;;  %2046 = vmatpush.msrb.mxu1 %v4863_v18 }
 0x336   : > { %2270 = vmatpush.msrb.mxu3 %v4864_v19  ;;  %v1099_v19 = vld [vmem:[%s4812_s5 + $0xd0] sm:$0xff] }
 0x337   : > { %2158 = vmatpush.msrb.mxu2 %v4865_v21 }
 0x338   : > { %2271 = vmatpush.msrb.mxu3 %v4866_v22 }
 0x339   : > { %2673 = vmatmul.msk.f32.gmra.mxu2 %vm1105_vm4, %v1078_v8 }
 0x33a   : > { %2706 = vmatmul.msk.f32.gmra.mxu3 %vm1105_vm4, %v1078_v8  ;;  %2608 = vmatmul.msk.f32.gmra.mxu0 %vm1105_vm4, %v1079_v20 }
 0x33b   : > { %2641 = vmatmul.msk.f32.gmra.mxu1 %vm1105_vm4, %v1079_v20  ;;  %2159 = vmatpush.msrb.mxu2 %v4867_v23 }
 0x33c   : > { %2272 = vmatpush.msrb.mxu3 %v4868_v24  ;;  %v1100_v24 = vld [vmem:[%s4812_s5 + $0xd8] sm:$0xff] }
 0x341   : > { %2674 = vmatmul.msk.f32.gmra.mxu2 %vm1105_vm4, %v1079_v20 }
 0x342   : > { %2707 = vmatmul.msk.f32.gmra.mxu3 %vm1105_vm4, %v1079_v20  ;;  %2609 = vmatmul.msk.f32.gmra.mxu0 %vm1105_vm4, %v1080_v25 }
 0x343   : > { %2642 = vmatmul.msk.f32.gmra.mxu1 %vm1105_vm4, %v1080_v25 }
 0x349   : > { %2675 = vmatmul.msk.f32.gmra.mxu2 %vm1105_vm4, %v1080_v25 }
 0x34a   : > { %2708 = vmatmul.msk.f32.gmra.mxu3 %vm1105_vm4, %v1080_v25  ;;  %2610 = vmatmul.msk.f32.gmra.mxu0 %vm1105_vm4, %v1081_v26 }
 0x34b   : > { %2643 = vmatmul.msk.f32.gmra.mxu1 %vm1105_vm4, %v1081_v26 }
 0x351   : > { %2676 = vmatmul.msk.f32.gmra.mxu2 %vm1105_vm4, %v1081_v26 }
 0x352   : > { %2709 = vmatmul.msk.f32.gmra.mxu3 %vm1105_vm4, %v1081_v26  ;;  %2611 = vmatmul.msk.f32.gmra.mxu0 %vm1105_vm4, %v1082_v27 }
 0x353   : > { %2644 = vmatmul.msk.f32.gmra.mxu1 %vm1105_vm4, %v1082_v27 }
 0x359   : > { %2677 = vmatmul.msk.f32.gmra.mxu2 %vm1105_vm4, %v1082_v27 }
 0x35a   : > { %2710 = vmatmul.msk.f32.gmra.mxu3 %vm1105_vm4, %v1082_v27  ;;  %2612 = vmatmul.msk.f32.gmra.mxu0 %vm1105_vm4, %v1083_v28 }
 0x35b   : > { %2645 = vmatmul.msk.f32.gmra.mxu1 %vm1105_vm4, %v1083_v28 }
 0x361   : > { %2678 = vmatmul.msk.f32.gmra.mxu2 %vm1105_vm4, %v1083_v28 }
 0x362   : > { %2711 = vmatmul.msk.f32.gmra.mxu3 %vm1105_vm4, %v1083_v28  ;;  %2613 = vmatmul.msk.f32.gmra.mxu0 %vm1105_vm4, %v1084_v29 }
 0x363   : > { %2646 = vmatmul.msk.f32.gmra.mxu1 %vm1105_vm4, %v1084_v29 }
 0x369   : > { %2679 = vmatmul.msk.f32.gmra.mxu2 %vm1105_vm4, %v1084_v29 }
 0x36a   : > { %2712 = vmatmul.msk.f32.gmra.mxu3 %vm1105_vm4, %v1084_v29  ;;  %2614 = vmatmul.msk.f32.gmra.mxu0 %vm1105_vm4, %v1085_v30  ;;  %v1101_v29 = vld [vmem:[%s4812_s5 + $0xe0] sm:$0xff] }
 0x36b   : > { %2647 = vmatmul.msk.f32.gmra.mxu1 %vm1105_vm4, %v1085_v30 }
 0x371   : > { %2680 = vmatmul.msk.f32.gmra.mxu2 %vm1105_vm4, %v1085_v30 }
 0x372   : > { %2713 = vmatmul.msk.f32.gmra.mxu3 %vm1105_vm4, %v1085_v30  ;;  %2615 = vmatmul.msk.f32.gmra.mxu0 %vm1105_vm4, %v1086_v31 }
 0x373   : > { %2648 = vmatmul.msk.f32.gmra.mxu1 %vm1105_vm4, %v1086_v31 }
 0x379   : > { %2681 = vmatmul.msk.f32.gmra.mxu2 %vm1105_vm4, %v1086_v31 }
 0x37a   : > { %2714 = vmatmul.msk.f32.gmra.mxu3 %vm1105_vm4, %v1086_v31  ;;  %2616 = vmatmul.msk.f32.gmra.mxu0 %vm1105_vm4, %v1087_v32 }
 0x37b   : > { %2649 = vmatmul.msk.f32.gmra.mxu1 %vm1105_vm4, %v1087_v32 }
 0x381   : > { %2682 = vmatmul.msk.f32.gmra.mxu2 %vm1105_vm4, %v1087_v32 }
 0x382   : > { %2715 = vmatmul.msk.f32.gmra.mxu3 %vm1105_vm4, %v1087_v32  ;;  %2617 = vmatmul.msk.f32.gmra.mxu0 %vm1105_vm4, %v1088_v33 }
 0x383   : > { %2650 = vmatmul.msk.f32.gmra.mxu1 %vm1105_vm4, %v1088_v33 }
 0x387   : > { %v3821_v34 = vpop.f32.mrf.mxu0 }
 0x388   : > { %v3826_v36 = vpop.f32.mrf.mxu1 }
 0x389   : > { %2683 = vmatmul.msk.f32.gmra.mxu2 %vm1105_vm4, %v1088_v33 }
 0x38a   : > { %2716 = vmatmul.msk.f32.gmra.mxu3 %vm1105_vm4, %v1088_v33  ;;  %2618 = vmatmul.msk.f32.gmra.mxu0 %vm1105_vm4, %v1089_v35 }
 0x38b   : > { %2651 = vmatmul.msk.f32.gmra.mxu1 %vm1105_vm4, %v1089_v35 }
 0x38f   : > { %v3832_v37 = vpop.f32.mrf.mxu0 }
 0x390   : > { %v3837_v39 = vpop.f32.mrf.mxu1 }
 0x391   : > { %2684 = vmatmul.msk.f32.gmra.mxu2 %vm1105_vm4, %v1089_v35 }
 0x392   : > { %2717 = vmatmul.msk.f32.gmra.mxu3 %vm1105_vm4, %v1089_v35  ;;  %2619 = vmatmul.msk.f32.gmra.mxu0 %vm1105_vm4, %v1090_v38  ;;  %v1102_v35 = vld [vmem:[%s4812_s5 + $0xe8] sm:$0xff] }
 0x393   : > { %2652 = vmatmul.msk.f32.gmra.mxu1 %vm1105_vm4, %v1090_v38 }
 0x394   : > { %v3843_v40 = vpop.f32.mrf.mxu2 }
 0x395   : > { %v3845_v42 = vpop.f32.mrf.mxu3 }
 0x397   : > { %v3847_v43 = vpop.f32.mrf.mxu0 }
 0x398   : > { %v3852_v47 = vpop.f32.mrf.mxu1 }
 0x399   : > { %2685 = vmatmul.msk.f32.gmra.mxu2 %vm1105_vm4, %v1090_v38 }
 0x39a   : > { %2718 = vmatmul.msk.f32.gmra.mxu3 %vm1105_vm4, %v1090_v38  ;;  %2620 = vmatmul.msk.f32.gmra.mxu0 %vm1105_vm4, %v1091_v46 }
 0x39b   : > { %2653 = vmatmul.msk.f32.gmra.mxu1 %vm1105_vm4, %v1091_v46 }
 0x39c   : > { %v3858_v50 = vpop.f32.mrf.mxu2 }
 0x39d   : > { %v3860_v51 = vpop.f32.mrf.mxu3 }
 0x39f   : > { %v3862_v53 = vpop.f32.mrf.mxu0 }
 0x3a0   : > { %v3867_v49 = vpop.f32.mrf.mxu1 }
 0x3a1   : > { %2686 = vmatmul.msk.f32.gmra.mxu2 %vm1105_vm4, %v1091_v46 }
 0x3a2   : > { %2719 = vmatmul.msk.f32.gmra.mxu3 %vm1105_vm4, %v1091_v46  ;;  %2621 = vmatmul.msk.f32.gmra.mxu0 %vm1105_vm4, %v1092_v58 }
 0x3a3   : > { %2654 = vmatmul.msk.f32.gmra.mxu1 %vm1105_vm4, %v1092_v58 }
 0x3a4   : > { %v3873_v48 = vpop.f32.mrf.mxu2 }
 0x3a5   : > { %v3875_v45 = vpop.f32.mrf.mxu3 }
 0x3a7   : > { %v3877_v59 = vpop.f32.mrf.mxu0 }
 0x3a8   : > { %v3882_v57 = vpop.f32.mrf.mxu1 }
 0x3a9   : > { %2687 = vmatmul.msk.f32.gmra.mxu2 %vm1105_vm4, %v1092_v58 }
 0x3aa   : > { %2720 = vmatmul.msk.f32.gmra.mxu3 %vm1105_vm4, %v1092_v58  ;;  %2622 = vmatmul.msk.f32.gmra.mxu0 %vm1105_vm4, %v1093_v61 }
 0x3ab   : > { %2655 = vmatmul.msk.f32.gmra.mxu1 %vm1105_vm4, %v1093_v61 }
 0x3ac   : > { %v3888_v56 = vpop.f32.mrf.mxu2 }
 0x3ad   : > { %v3890_v52 = vpop.f32.mrf.mxu3 }
 0x3af   : > { %v3892_v41 = vpop.f32.mrf.mxu0 }
 0x3b0   : > { %v3897_v55 = vpop.f32.mrf.mxu1 }
 0x3b1   : > { %2688 = vmatmul.msk.f32.gmra.mxu2 %vm1105_vm4, %v1093_v61 }
 0x3b2   : > { %2721 = vmatmul.msk.f32.gmra.mxu3 %vm1105_vm4, %v1093_v61  ;;  %2623 = vmatmul.msk.f32.gmra.mxu0 %vm1105_vm4, %v1094_v44 }
 0x3b3   : > { %2656 = vmatmul.msk.f32.gmra.mxu1 %vm1105_vm4, %v1094_v44 }
 0x3b4   : > { %v3903_v54 = vpop.f32.mrf.mxu2 }
 0x3b5   : > { %v3905_v60 = vpop.f32.mrf.mxu3 }
 0x3b7   : > { %v3907_v62 = vpop.f32.mrf.mxu0 }
 0x3b8   : > { %v3912_v2 = vpop.f32.mrf.mxu1 }
 0x3b9   : > { %2689 = vmatmul.msk.f32.gmra.mxu2 %vm1105_vm4, %v1094_v44 }
 0x3ba   : > { %2722 = vmatmul.msk.f32.gmra.mxu3 %vm1105_vm4, %v1094_v44  ;;  %2624 = vmatmul.msk.f32.gmra.mxu0 %vm1105_vm4, %v1095_v63  ;;  %v1103_v44 = vld [vmem:[%s4812_s5 + $0xf0] sm:$0xff] }
 0x3bb   : > { %2657 = vmatmul.msk.f32.gmra.mxu1 %vm1105_vm4, %v1095_v63 }
 0x3bc   : > { %v3918_v3 = vpop.f32.mrf.mxu2 }
 0x3bd   : > { %v3920_v6 = vpop.f32.mrf.mxu3 }
 0x3bf   : > { %v3922_v7 = vpop.f32.mrf.mxu0 }
 0x3c0   : > { %v3927_v1 = vpop.f32.mrf.mxu1 }
 0x3c1   : > { %2690 = vmatmul.msk.f32.gmra.mxu2 %vm1105_vm4, %v1095_v63 }
 0x3c2   : > { %2723 = vmatmul.msk.f32.gmra.mxu3 %vm1105_vm4, %v1095_v63  ;;  %2625 = vmatmul.msk.f32.gmra.mxu0 %vm1105_vm4, %v1096_v0 }
 0x3c3   : > { %2658 = vmatmul.msk.f32.gmra.mxu1 %vm1105_vm4, %v1096_v0 }
 0x3c4   : > { %v3933_v4 = vpop.f32.mrf.mxu2 }
 0x3c5   : > { %v3935_v5 = vpop.f32.mrf.mxu3 }
 0x3c7   : > { %v3937_v8 = vpop.f32.mrf.mxu0 }
 0x3c8   : > { %v3942_v10 = vpop.f32.mrf.mxu1 }
 0x3c9   : > { %2691 = vmatmul.msk.f32.gmra.mxu2 %vm1105_vm4, %v1096_v0 }
 0x3ca   : > { %2724 = vmatmul.msk.f32.gmra.mxu3 %vm1105_vm4, %v1096_v0  ;;  %2626 = vmatmul.msk.f32.gmra.mxu0 %vm1105_vm4, %v1097_v9 }
 0x3cb   : > { %2659 = vmatmul.msk.f32.gmra.mxu1 %vm1105_vm4, %v1097_v9 }
 0x3cc   : > { %v3948_v11 = vpop.f32.mrf.mxu2 }
 0x3cd   : > { %v3950_v12 = vpop.f32.mrf.mxu3 }
 0x3cf   : > { %v3952_v13 = vpop.f32.mrf.mxu0 }
 0x3d0   : > { %v3957_v15 = vpop.f32.mrf.mxu1 }
 0x3d1   : > { %2692 = vmatmul.msk.f32.gmra.mxu2 %vm1105_vm4, %v1097_v9 }
 0x3d2   : > { %2725 = vmatmul.msk.f32.gmra.mxu3 %vm1105_vm4, %v1097_v9  ;;  %2627 = vmatmul.msk.f32.gmra.mxu0 %vm1105_vm4, %v1098_v14 }
 0x3d3   : > { %2660 = vmatmul.msk.f32.gmra.mxu1 %vm1105_vm4, %v1098_v14 }
 0x3d4   : > { %v3963_v16 = vpop.f32.mrf.mxu2 }
 0x3d5   : > { %v3965_v17 = vpop.f32.mrf.mxu3 }
 0x3d7   : > { %v3967_v18 = vpop.f32.mrf.mxu0 }
 0x3d8   : > { %v3972_v20 = vpop.f32.mrf.mxu1 }
 0x3d9   : > { %2693 = vmatmul.msk.f32.gmra.mxu2 %vm1105_vm4, %v1098_v14 }
 0x3da   : > { %2726 = vmatmul.msk.f32.gmra.mxu3 %vm1105_vm4, %v1098_v14  ;;  %2628 = vmatmul.msk.f32.gmra.mxu0 %vm1105_vm4, %v1099_v19 }
 0x3db   : > { %2661 = vmatmul.msk.f32.gmra.mxu1 %vm1105_vm4, %v1099_v19 }
 0x3dc   : > { %v3978_v21 = vpop.f32.mrf.mxu2 }
 0x3dd   : > { %v3980_v22 = vpop.f32.mrf.mxu3 }
 0x3df   : > { %v3982_v23 = vpop.f32.mrf.mxu0 }
 0x3e0   : > { %v3987_v25 = vpop.f32.mrf.mxu1 }
 0x3e1   : > { %2694 = vmatmul.msk.f32.gmra.mxu2 %vm1105_vm4, %v1099_v19 }
 0x3e2   : > { %2727 = vmatmul.msk.f32.gmra.mxu3 %vm1105_vm4, %v1099_v19  ;;  %2629 = vmatmul.msk.f32.gmra.mxu0 %vm1105_vm4, %v1100_v24  ;;  %v1104_v19 = vld [vmem:[%s4812_s5 + $0xf8] sm:$0xff] }
 0x3e3   : > { %2662 = vmatmul.msk.f32.gmra.mxu1 %vm1105_vm4, %v1100_v24 }
 0x3e4   : > { %v3993_v26 = vpop.f32.mrf.mxu2 }
 0x3e5   : > { %v3995_v27 = vpop.f32.mrf.mxu3 }
 0x3e7   : > { %v3997_v28 = vpop.f32.mrf.mxu0 }
 0x3e8   : > { %v4002_v30 = vpop.f32.mrf.mxu1 }
 0x3e9   : > { %2695 = vmatmul.msk.f32.gmra.mxu2 %vm1105_vm4, %v1100_v24 }
 0x3ea   : > { %2728 = vmatmul.msk.f32.gmra.mxu3 %vm1105_vm4, %v1100_v24  ;;  %2630 = vmatmul.msk.f32.gmra.mxu0 %vm1105_vm4, %v1101_v29 }
 0x3eb   : > { %2663 = vmatmul.msk.f32.gmra.mxu1 %vm1105_vm4, %v1101_v29 }
 0x3ec   : > { %v4008_v31 = vpop.f32.mrf.mxu2 }
 0x3ed   : > { %v4010_v32 = vpop.f32.mrf.mxu3 }
 0x3ef   : > { %v4012_v33 = vpop.f32.mrf.mxu0 }
 0x3f0   : > { %v4017_v38 = vpop.f32.mrf.mxu1 }
 0x3f1   : > { %2696 = vmatmul.msk.f32.gmra.mxu2 %vm1105_vm4, %v1101_v29 }
 0x3f2   : > { %2729 = vmatmul.msk.f32.gmra.mxu3 %vm1105_vm4, %v1101_v29  ;;  %2631 = vmatmul.msk.f32.gmra.mxu0 %vm1105_vm4, %v1102_v35 }
 0x3f3   : > { %2664 = vmatmul.msk.f32.gmra.mxu1 %vm1105_vm4, %v1102_v35 }
 0x3f4   : > { %v4023_v46 = vpop.f32.mrf.mxu2 }
 0x3f5   : > { %v4025_v58 = vpop.f32.mrf.mxu3 }
 0x3f7   : > { %v4027_v61 = vpop.f32.mrf.mxu0 }
 0x3f8   : > { %4869 = vst [vmem:[#allocation5_spill] sm:$0xff] %v4027_v61  ;;  %v4032_v63 = vpop.f32.mrf.mxu1 }
 0x3f9   : > { %4870 = vst [vmem:[#allocation12_spill] sm:$0xff] %v4032_v63  ;;  %2697 = vmatmul.msk.f32.gmra.mxu2 %vm1105_vm4, %v1102_v35 }
 0x3fa   : > { %2730 = vmatmul.msk.f32.gmra.mxu3 %vm1105_vm4, %v1102_v35  ;;  %2632 = vmatmul.msk.f32.gmra.mxu0 %vm1105_vm4, %v1103_v44  ;;  %v1662_v35 = vld [vmem:[%s4813_s6] sm:$0xff] }
 0x3fb   : > { %2665 = vmatmul.msk.f32.gmra.mxu1 %vm1105_vm4, %v1103_v44 }
 0x3fc   : > { %v4038_v0 = vpop.f32.mrf.mxu2 }
 0x3fd   : > { %4871 = vst [vmem:[#allocation6_spill] sm:$0xff] %v4038_v0  ;;  %v4040_v9 = vpop.f32.mrf.mxu3 }
 0x3fe   : > { %4872 = vst [vmem:[#allocation13_spill] sm:$0xff] %v4040_v9 }
 0x3ff   : > { %v4042_v14 = vpop.f32.mrf.mxu0 }
 0x400   : > { %4873 = vst [vmem:[#allocation7_spill] sm:$0xff] %v4042_v14  ;;  %v4047_v24 = vpop.f32.mrf.mxu1 }
 0x401   : > { %4874 = vst [vmem:[#allocation16_spill] sm:$0xff] %v4047_v24  ;;  %2698 = vmatmul.msk.f32.gmra.mxu2 %vm1105_vm4, %v1103_v44  ;;  %v1663_v24 = vld [vmem:[%s4813_s6 + $0x8] sm:$0xff] }
 0x402   : > { %2731 = vmatmul.msk.f32.gmra.mxu3 %vm1105_vm4, %v1103_v44  ;;  %2633 = vmatmul.msk.f32.gmra.mxu0 %vm1105_vm4, %v1104_v19  ;;  %v1790_v44 = vmul.f32 %v1662_v35, %v3821_v34  ;;  %v1791_v61 = vmul.f32 %v1663_v24, %v3826_v36  ;;  %v1666_v34 = vld [vmem:[%s4813_s6 + $0x20] sm:$0xff]  ;;  %v1665_v36 = vld [vmem:[%s4813_s6 + $0x18] sm:$0xff] }
 0x403   : > { %2666 = vmatmul.msk.f32.gmra.mxu1 %vm1105_vm4, %v1104_v19 }
 0x404   : > { %v4053_v29 = vpop.f32.mrf.mxu2 }
 0x405   : > { %4875 = vst [vmem:[#allocation17_spill] sm:$0xff] %v4053_v29  ;;  %v4058_v14 = vpop.f32.mrf.mxu3 }
 0x406   : > { %4876 = vst [vmem:[#allocation8_spill] sm:$0xff] %v4058_v14  ;;  %v1664_v14 = vld [vmem:[%s4813_s6 + $0x10] sm:$0xff] }
 0x407   : > { %v4063_v63 = vpop.f32.mrf.mxu0 }
 0x408   : > { %4877 = vst [vmem:[#allocation9_spill] sm:$0xff] %v4063_v63  ;;  %v4066_v9 = vpop.f32.mrf.mxu1 }
 0x409   : > { %4878 = vst [vmem:[#allocation20_spill] sm:$0xff] %v4066_v9  ;;  %2699 = vmatmul.msk.f32.gmra.mxu2 %vm1105_vm4, %v1104_v19  ;;  %v1793_v9 = vmul.f32 %v1665_v36, %v3845_v42 }
 0x40a   : > { %2732 = vmatmul.msk.f32.gmra.mxu3 %vm1105_vm4, %v1104_v19  ;;  %1934 = vmatmul.f32.vlgmr.msrb.gmra.mxu0 %v1790_v44  ;;  %v1792_v19 = vmul.f32 %v1664_v14, %v3843_v40  ;;  %v1794_v44 = vmul.f32 %v1666_v34, %v3832_v37  ;;  %v1670_v37 = vld [vmem:[%s4813_s6 + $0x40] sm:$0xff]  ;;  %v1669_v40 = vld [vmem:[%s4813_s6 + $0x38] sm:$0xff] }
 0x40b   : > { %2047 = vmatmul.f32.vlgmr.msrb.gmra.mxu1 %v1791_v61  ;;  %v1667_v61 = vld [vmem:[%s4813_s6 + $0x28] sm:$0xff]  ;;  %v1797_v34 = vmul.f32 %v1669_v40, %v3860_v51 }
 0x40c   : > { %v4074_v29 = vpop.f32.mrf.mxu2 }
 0x40d   : > { %4879 = vst [vmem:[#allocation10_spill] sm:$0xff] %v4074_v29  ;;  %v4082_v24 = vpop.f32.mrf.mxu3  ;;  %v1795_v29 = vmul.f32 %v1667_v61, %v3837_v39  ;;  %v1671_v39 = vld [vmem:[%s4813_s6 + $0x48] sm:$0xff] }
 0x40e   : > { %4880 = vst [vmem:[#allocation21_spill] sm:$0xff] %v4082_v24  ;;  %v1668_v24 = vld [vmem:[%s4813_s6 + $0x30] sm:$0xff]  ;;  %v1799_v61 = vmul.f32 %v1671_v39, %v3852_v47  ;;  %v1675_v47 = vld [vmem:[%s4813_s6 + $0x68] sm:$0xff] }
 0x40f   : > { %v4088_v35 = vpop.f32.mrf.mxu0 }
 0x410   : > { %v4092_v63 = vpop.f32.mrf.mxu1 }
 0x411   : > { %2160 = vmatmul.f32.vlgmr.msrb.gmra.mxu2 %v1792_v19  ;;  %v1672_v19 = vld [vmem:[%s4813_s6 + $0x50] sm:$0xff] }
 0x412   : > { %2273 = vmatmul.f32.vlgmr.msrb.gmra.mxu3 %v1793_v9  ;;  %1937 = vmatmul.f32.gmra.mxu0 %v1794_v44  ;;  %v1796_v9 = vmul.f32 %v1668_v24, %v3858_v50  ;;  %v1673_v50 = vld [vmem:[%s4813_s6 + $0x58] sm:$0xff]  ;;  %v1800_v24 = vmul.f32 %v1672_v19, %v3873_v48 }
 0x413   : > { %2050 = vmatmul.f32.gmra.mxu1 %v1795_v29  ;;  %v1798_v29 = vmul.f32 %v1670_v37, %v3847_v43  ;;  %v1674_v43 = vld [vmem:[%s4813_s6 + $0x60] sm:$0xff]  ;;  %v1801_v39 = vmul.f32 %v1673_v50, %v3875_v45  ;;  %v1677_v48 = vld [vmem:[%s4813_s6 + $0x78] sm:$0xff] }
 0x414   : > { %v4098_v0 = vpop.f32.mrf.mxu2  ;;  %v1802_v40 = vmul.f32 %v1674_v43, %v3862_v53  ;;  %v1678_v53 = vld [vmem:[%s4813_s6 + $0x80] sm:$0xff] }
 0x415   : > { %v4106_v42 = vpop.f32.mrf.mxu3  ;;  %v1806_v50 = vmul.f32 %v1678_v53, %v3877_v59  ;;  %v1682_v59 = vld [vmem:[%s4813_s6 + $0xa0] sm:$0xff] }
 0x417   : > { %v4112_v14 = vpop.f32.mrf.mxu0 }
 0x418   : > { %v4116_v36 = vpop.f32.mrf.mxu1 }
 0x419   : > { %2163 = vmatmul.f32.gmra.mxu2 %v1796_v9 }
 0x41a   : > { %2276 = vmatmul.f32.gmra.mxu3 %v1797_v34  ;;  %1940 = vmatmul.f32.gmra.mxu0 %v1798_v29  ;;  %v1803_v29 = vmul.f32 %v1675_v47, %v3867_v49  ;;  %v1676_v34 = vld [vmem:[%s4813_s6 + $0x70] sm:$0xff]  ;;  %v1679_v49 = vld [vmem:[%s4813_s6 + $0x88] sm:$0xff]  ;;  %v1805_v47 = vmul.f32 %v1677_v48, %v3890_v52  ;;  %v1810_v48 = vmul.f32 %v1682_v59, %v3892_v41  ;;  %v1686_v41 = vld [vmem:[%s4813_s6 + $0xc0] sm:$0xff] }
 0x41b   : > { %2053 = vmatmul.f32.gmra.mxu1 %v1799_v61  ;;  %v1804_v19 = vmul.f32 %v1676_v34, %v3888_v56  ;;  %v1681_v56 = vld [vmem:[%s4813_s6 + $0x98] sm:$0xff] }
 0x41c   : > { %v4122_v44 = vpop.f32.mrf.mxu2 }
 0x41d   : > { %v4130_v51 = vpop.f32.mrf.mxu3 }
 0x41f   : > { %v4136_v37 = vpop.f32.mrf.mxu0 }
 0x420   : > { %v4140_v9 = vpop.f32.mrf.mxu1 }
 0x421   : > { %2166 = vmatmul.f32.gmra.mxu2 %v1800_v24 }
 0x422   : > { %2279 = vmatmul.f32.gmra.mxu3 %v1801_v39  ;;  %1943 = vmatmul.f32.gmra.mxu0 %v1802_v40  ;;  %v1807_v40 = vmul.f32 %v1679_v49, %v3882_v57  ;;  %v1680_v39 = vld [vmem:[%s4813_s6 + $0x90] sm:$0xff]  ;;  %v1683_v57 = vld [vmem:[%s4813_s6 + $0xa8] sm:$0xff]  ;;  %v1809_v49 = vmul.f32 %v1681_v56, %v3905_v60  ;;  %v1814_v56 = vmul.f32 %v1686_v41, %v3907_v62  ;;  %v1690_v62 = vld [vmem:[%s4813_s6 + $0xe0] sm:$0xff] }
 0x423   : > { %2056 = vmatmul.f32.gmra.mxu1 %v1803_v29  ;;  %v1808_v34 = vmul.f32 %v1680_v39, %v3903_v54  ;;  %v1685_v54 = vld [vmem:[%s4813_s6 + $0xb8] sm:$0xff] }
 0x424   : > { %v4146_v61 = vpop.f32.mrf.mxu2 }
 0x425   : > { %v4154_v45 = vpop.f32.mrf.mxu3 }
 0x427   : > { %v4160_v43 = vpop.f32.mrf.mxu0 }
 0x428   : > { %v4164_v24 = vpop.f32.mrf.mxu1 }
 0x429   : > { %2169 = vmatmul.f32.gmra.mxu2 %v1804_v19 }
 0x42a   : > { %2282 = vmatmul.f32.gmra.mxu3 %v1805_v47  ;;  %1946 = vmatmul.f32.gmra.mxu0 %v1806_v50  ;;  %v1811_v50 = vmul.f32 %v1683_v57, %v3897_v55  ;;  %v1684_v47 = vld [vmem:[%s4813_s6 + $0xb0] sm:$0xff]  ;;  %v1687_v55 = vld [vmem:[%s4813_s6 + $0xc8] sm:$0xff]  ;;  %v1813_v57 = vmul.f32 %v1685_v54, %v3920_v6  ;;  %v1818_v54 = vmul.f32 %v1690_v62, %v3922_v7  ;;  %v1694_v7 = vld [vmem:[%s4813_s6 + $0x100] sm:$0xff] }
 0x42b   : > { %2059 = vmatmul.f32.gmra.mxu1 %v1807_v40  ;;  %v1812_v39 = vmul.f32 %v1684_v47, %v3918_v3  ;;  %v1689_v3 = vld [vmem:[%s4813_s6 + $0xd8] sm:$0xff] }
 0x42c   : > { %v4170_v29 = vpop.f32.mrf.mxu2 }
 0x42d   : > { %v4178_v52 = vpop.f32.mrf.mxu3 }
 0x42f   : > { %v4184_v53 = vpop.f32.mrf.mxu0 }
 0x430   : > { %v4188_v19 = vpop.f32.mrf.mxu1 }
 0x431   : > { %2172 = vmatmul.f32.gmra.mxu2 %v1808_v34 }
 0x432   : > { %2285 = vmatmul.f32.gmra.mxu3 %v1809_v49  ;;  %1949 = vmatmul.f32.gmra.mxu0 %v1810_v48  ;;  %v1815_v48 = vmul.f32 %v1687_v55, %v3912_v2  ;;  %v1688_v49 = vld [vmem:[%s4813_s6 + $0xd0] sm:$0xff]  ;;  %v1691_v2 = vld [vmem:[%s4813_s6 + $0xe8] sm:$0xff]  ;;  %v1817_v55 = vmul.f32 %v1689_v3, %v3935_v5  ;;  %v1822_v3 = vmul.f32 %v1694_v7, %v3937_v8  ;;  %v1698_v8 = vld [vmem:[%s4813_s6 + $0x120] sm:$0xff] }
 0x433   : > { %2062 = vmatmul.f32.gmra.mxu1 %v1811_v50  ;;  %v1816_v47 = vmul.f32 %v1688_v49, %v3933_v4  ;;  %v1693_v4 = vld [vmem:[%s4813_s6 + $0xf8] sm:$0xff] }
 0x434   : > { %v4194_v40 = vpop.f32.mrf.mxu2 }
 0x435   : > { %v4202_v60 = vpop.f32.mrf.mxu3 }
 0x437   : > { %v4208_v59 = vpop.f32.mrf.mxu0 }
 0x438   : > { %v4212_v34 = vpop.f32.mrf.mxu1 }
 0x439   : > { %2175 = vmatmul.f32.gmra.mxu2 %v1812_v39 }
 0x43a   : > { %2288 = vmatmul.f32.gmra.mxu3 %v1813_v57  ;;  %1952 = vmatmul.f32.gmra.mxu0 %v1814_v56  ;;  %v1819_v56 = vmul.f32 %v1691_v2, %v3927_v1  ;;  %v1692_v57 = vld [vmem:[%s4813_s6 + $0xf0] sm:$0xff]  ;;  %v1695_v1 = vld [vmem:[%s4813_s6 + $0x108] sm:$0xff]  ;;  %v1821_v2 = vmul.f32 %v1693_v4, %v3950_v12  ;;  %v1826_v4 = vmul.f32 %v1698_v8, %v3952_v13  ;;  %v1702_v13 = vld [vmem:[%s4813_s6 + $0x140] sm:$0xff] }
 0x43b   : > { %2065 = vmatmul.f32.gmra.mxu1 %v1815_v48  ;;  %v1820_v49 = vmul.f32 %v1692_v57, %v3948_v11  ;;  %v1697_v11 = vld [vmem:[%s4813_s6 + $0x118] sm:$0xff] }
 0x43c   : > { %v4218_v50 = vpop.f32.mrf.mxu2 }
 0x43d   : > { %v4226_v6 = vpop.f32.mrf.mxu3 }
 0x43f   : > { %v4232_v41 = vpop.f32.mrf.mxu0 }
 0x440   : > { %v4236_v39 = vpop.f32.mrf.mxu1 }
 0x441   : > { %2178 = vmatmul.f32.gmra.mxu2 %v1816_v47 }
 0x442   : > { %2291 = vmatmul.f32.gmra.mxu3 %v1817_v55  ;;  %1955 = vmatmul.f32.gmra.mxu0 %v1818_v54  ;;  %v1823_v54 = vmul.f32 %v1695_v1, %v3942_v10  ;;  %v1696_v55 = vld [vmem:[%s4813_s6 + $0x110] sm:$0xff]  ;;  %v1699_v10 = vld [vmem:[%s4813_s6 + $0x128] sm:$0xff]  ;;  %v1825_v1 = vmul.f32 %v1697_v11, %v3965_v17  ;;  %v1830_v11 = vmul.f32 %v1702_v13, %v3967_v18  ;;  %v1706_v18 = vld [vmem:[%s4813_s6 + $0x160] sm:$0xff] }
 0x443   : > { %2068 = vmatmul.f32.gmra.mxu1 %v1819_v56  ;;  %v1824_v57 = vmul.f32 %v1696_v55, %v3963_v16  ;;  %v1701_v16 = vld [vmem:[%s4813_s6 + $0x138] sm:$0xff] }
 0x444   : > { %v4242_v48 = vpop.f32.mrf.mxu2 }
 0x445   : > { %v4250_v5 = vpop.f32.mrf.mxu3 }
 0x447   : > { %v4256_v62 = vpop.f32.mrf.mxu0 }
 0x448   : > { %v4260_v47 = vpop.f32.mrf.mxu1 }
 0x449   : > { %2181 = vmatmul.f32.gmra.mxu2 %v1820_v49 }
 0x44a   : > { %2294 = vmatmul.f32.gmra.mxu3 %v1821_v2  ;;  %1958 = vmatmul.f32.gmra.mxu0 %v1822_v3  ;;  %v1827_v3 = vmul.f32 %v1699_v10, %v3957_v15  ;;  %v1700_v2 = vld [vmem:[%s4813_s6 + $0x130] sm:$0xff]  ;;  %v1703_v15 = vld [vmem:[%s4813_s6 + $0x148] sm:$0xff]  ;;  %v1829_v10 = vmul.f32 %v1701_v16, %v3980_v22  ;;  %v1834_v16 = vmul.f32 %v1706_v18, %v3982_v23  ;;  %v1710_v23 = vld [vmem:[%s4813_s6 + $0x180] sm:$0xff] }
 0x44b   : > { %2071 = vmatmul.f32.gmra.mxu1 %v1823_v54  ;;  %v1828_v55 = vmul.f32 %v1700_v2, %v3978_v21  ;;  %v1705_v21 = vld [vmem:[%s4813_s6 + $0x158] sm:$0xff] }
 0x44c   : > { %v4266_v56 = vpop.f32.mrf.mxu2 }
 0x44d   : > { %v4274_v12 = vpop.f32.mrf.mxu3 }
 0x44f   : > { %v4280_v7 = vpop.f32.mrf.mxu0 }
 0x450   : > { %v4284_v49 = vpop.f32.mrf.mxu1 }
 0x451   : > { %2184 = vmatmul.f32.gmra.mxu2 %v1824_v57 }
 0x452   : > { %2297 = vmatmul.f32.gmra.mxu3 %v1825_v1  ;;  %1961 = vmatmul.f32.gmra.mxu0 %v1826_v4  ;;  %v1831_v4 = vmul.f32 %v1703_v15, %v3972_v20  ;;  %v1704_v1 = vld [vmem:[%s4813_s6 + $0x150] sm:$0xff]  ;;  %v1707_v20 = vld [vmem:[%s4813_s6 + $0x168] sm:$0xff]  ;;  %v1833_v15 = vmul.f32 %v1705_v21, %v3995_v27  ;;  %v1838_v21 = vmul.f32 %v1710_v23, %v3997_v28  ;;  %v1714_v28 = vld [vmem:[%s4813_s6 + $0x1a0] sm:$0xff] }
 0x453   : > { %2074 = vmatmul.f32.gmra.mxu1 %v1827_v3  ;;  %v1832_v2 = vmul.f32 %v1704_v1, %v3993_v26  ;;  %v1709_v26 = vld [vmem:[%s4813_s6 + $0x178] sm:$0xff] }
 0x454   : > { %v4290_v54 = vpop.f32.mrf.mxu2 }
 0x455   : > { %v4298_v17 = vpop.f32.mrf.mxu3 }
 0x457   : > { %v4304_v8 = vpop.f32.mrf.mxu0 }
 0x458   : > { %v4308_v57 = vpop.f32.mrf.mxu1 }
 0x459   : > { %2187 = vmatmul.f32.gmra.mxu2 %v1828_v55 }
 0x45a   : > { %2300 = vmatmul.f32.gmra.mxu3 %v1829_v10  ;;  %1964 = vmatmul.f32.gmra.mxu0 %v1830_v11  ;;  %v1835_v11 = vmul.f32 %v1707_v20, %v3987_v25  ;;  %v1708_v10 = vld [vmem:[%s4813_s6 + $0x170] sm:$0xff]  ;;  %v1711_v25 = vld [vmem:[%s4813_s6 + $0x188] sm:$0xff]  ;;  %v1837_v20 = vmul.f32 %v1709_v26, %v4010_v32  ;;  %v1842_v26 = vmul.f32 %v1714_v28, %v4012_v33  ;;  %v1718_v33 = vld [vmem:[%s4813_s6 + $0x1c0] sm:$0xff] }
 0x45b   : > { %2077 = vmatmul.f32.gmra.mxu1 %v1831_v4  ;;  %v1836_v1 = vmul.f32 %v1708_v10, %v4008_v31  ;;  %v1713_v31 = vld [vmem:[%s4813_s6 + $0x198] sm:$0xff] }
 0x45c   : > { %v4314_v3 = vpop.f32.mrf.mxu2 }
 0x45d   : > { %v4322_v22 = vpop.f32.mrf.mxu3 }
 0x45f   : > { %v4328_v13 = vpop.f32.mrf.mxu0 }
 0x460   : > { %v4332_v55 = vpop.f32.mrf.mxu1 }
 0x461   : > { %2190 = vmatmul.f32.gmra.mxu2 %v1832_v2 }
 0x462   : > { %2303 = vmatmul.f32.gmra.mxu3 %v1833_v15  ;;  %1967 = vmatmul.f32.gmra.mxu0 %v1834_v16  ;;  %v1839_v16 = vmul.f32 %v1711_v25, %v4002_v30  ;;  %v1712_v15 = vld [vmem:[%s4813_s6 + $0x190] sm:$0xff]  ;;  %v1715_v30 = vld [vmem:[%s4813_s6 + $0x1a8] sm:$0xff]  ;;  %v1841_v25 = vmul.f32 %v1713_v31, %v4025_v58 }
 0x463   : > { %2080 = vmatmul.f32.gmra.mxu1 %v1835_v11  ;;  %v1840_v10 = vmul.f32 %v1712_v15, %v4023_v46  ;;  %v1717_v46 = vld [vmem:[%s4813_s6 + $0x1b8] sm:$0xff]  ;;  %v4885_v15 = vld [vmem:[#allocation6_spill] sm:$0xff] }
 0x464   : > { %v4338_v4 = vpop.f32.mrf.mxu2 }
 0x465   : > { %v4346_v27 = vpop.f32.mrf.mxu3 }
 0x467   : > { %v4352_v18 = vpop.f32.mrf.mxu0 }
 0x468   : > { %v4356_v2 = vpop.f32.mrf.mxu1 }
 0x469   : > { %2193 = vmatmul.f32.gmra.mxu2 %v1836_v1 }
 0x46a   : > { %2306 = vmatmul.f32.gmra.mxu3 %v1837_v20  ;;  %1970 = vmatmul.f32.gmra.mxu0 %v1838_v21  ;;  %v1843_v21 = vmul.f32 %v1715_v30, %v4017_v38  ;;  %v1716_v20 = vld [vmem:[%s4813_s6 + $0x1b0] sm:$0xff]  ;;  %v1719_v38 = vld [vmem:[%s4813_s6 + $0x1c8] sm:$0xff]  ;;  %v4887_v30 = vld [vmem:[#allocation5_spill] sm:$0xff] }
 0x46b   : > { %2083 = vmatmul.f32.gmra.mxu1 %v1839_v16  ;;  %v1844_v28 = vmul.f32 %v1716_v20, %v4885_v15  ;;  %v1722_v20 = vld [vmem:[%s4813_s6 + $0x1e0] sm:$0xff] }
 0x46c   : > { %v4362_v11 = vpop.f32.mrf.mxu2 }
 0x46d   : > { %v4370_v32 = vpop.f32.mrf.mxu3 }
 0x46f   : > { %v4376_v23 = vpop.f32.mrf.mxu0 }
 0x470   : > { %4881 = vst [vmem:[#allocation11_spill] sm:$0xff] %v4376_v23  ;;  %v4380_v1 = vpop.f32.mrf.mxu1 }
 0x471   : > { %4882 = vst [vmem:[#allocation14_spill] sm:$0xff] %v4380_v1  ;;  %2196 = vmatmul.f32.gmra.mxu2 %v1840_v10  ;;  %v1846_v10 = vmul.f32 %v1718_v33, %v4887_v30  ;;  %v4890_v1 = vld [vmem:[#allocation12_spill] sm:$0xff] }
 0x472   : > { %2309 = vmatmul.f32.gmra.mxu3 %v1841_v25  ;;  %1973 = vmatmul.f32.gmra.mxu0 %v1842_v26  ;;  %v4888_v26 = vld [vmem:[#allocation13_spill] sm:$0xff]  ;;  %v1847_v23 = vmul.f32 %v1719_v38, %v4890_v1  ;;  %v1721_v33 = vld [vmem:[%s4813_s6 + $0x1d8] sm:$0xff] }
 0x473   : > { %2086 = vmatmul.f32.gmra.mxu1 %v1843_v21  ;;  %v1845_v25 = vmul.f32 %v1717_v46, %v4888_v26  ;;  %v4893_v1 = vld [vmem:[#allocation17_spill] sm:$0xff] }
 0x474   : > { %v4386_v16 = vpop.f32.mrf.mxu2 }
 0x475   : > { %4883 = vst [vmem:[#allocation15_spill] sm:$0xff] %v4386_v16  ;;  %v4394_v58 = vpop.f32.mrf.mxu3 }
 0x476   : > { %4884 = vst [vmem:[#allocation18_spill] sm:$0xff] %v4394_v58  ;;  %v1720_v58 = vld [vmem:[%s4813_s6 + $0x1d0] sm:$0xff] }
 0x477   : > { %v4400_v31 = vpop.f32.mrf.mxu0  ;;  %v1848_v38 = vmul.f32 %v1720_v58, %v4893_v1 }
 0x478   : > { %4886 = vst [vmem:[#allocation19_spill] sm:$0xff] %v4400_v31  ;;  %v4404_v21 = vpop.f32.mrf.mxu1 }
 0x479   : > { %4889 = vst [vmem:[#allocation6_spill] sm:$0xff] %v4404_v21  ;;  %2199 = vmatmul.f32.gmra.mxu2 %v1844_v28  ;;  %v4895_v28 = vld [vmem:[#allocation7_spill] sm:$0xff]  ;;  %v4898_v21 = vld [vmem:[#allocation16_spill] sm:$0xff] }
 0x47a   : > { %2312 = vmatmul.f32.gmra.mxu3 %v1845_v25  ;;  %1976 = vmatmul.f32.gmra.mxu0 %v1846_v10  ;;  %v1850_v30 = vmul.f32 %v1722_v20, %v4895_v28  ;;  %v4896_v10 = vld [vmem:[#allocation8_spill] sm:$0xff]  ;;  %v1726_v20 = vld [vmem:[%s4813_s6 + $0x200] sm:$0xff] }
 0x47b   : > { %2089 = vmatmul.f32.gmra.mxu1 %v1847_v23  ;;  %v1723_v23 = vld [vmem:[%s4813_s6 + $0x1e8] sm:$0xff]  ;;  %v1849_v26 = vmul.f32 %v1721_v33, %v4896_v10  ;;  %v1725_v33 = vld [vmem:[%s4813_s6 + $0x1f8] sm:$0xff]  ;;  %v4902_v28 = vld [vmem:[#allocation9_spill] sm:$0xff] }
 0x47c   : > { %v4410_v16 = vpop.f32.mrf.mxu2  ;;  %v1851_v31 = vmul.f32 %v1723_v23, %v4898_v21  ;;  %v4901_v23 = vld [vmem:[#allocation10_spill] sm:$0xff]  ;;  %v4903_v10 = vld [vmem:[#allocation21_spill] sm:$0xff] }
 0x47d   : > { %4891 = vst [vmem:[#allocation5_spill] sm:$0xff] %v4410_v16  ;;  %v4418_v46 = vpop.f32.mrf.mxu3 }
 0x47e   : > { %4892 = vst [vmem:[#allocation13_spill] sm:$0xff] %v4418_v46  ;;  %v1724_v46 = vld [vmem:[%s4813_s6 + $0x1f0] sm:$0xff] }
 0x47f   : > { %v4424_v15 = vpop.f32.mrf.mxu0  ;;  %v1852_v1 = vmul.f32 %v1724_v46, %v4901_v23  ;;  %v1730_v46 = vld [vmem:[%s4813_s6 + $0x220] sm:$0xff] }
 0x480   : > { %4894 = vst [vmem:[#allocation12_spill] sm:$0xff] %v4424_v15  ;;  %v4428_v25 = vpop.f32.mrf.mxu1  ;;  %v4904_v15 = vld [vmem:[#allocation20_spill] sm:$0xff]  ;;  %v1858_v23 = vmul.f32 %v1730_v46, %v4088_v35  ;;  %v1734_v35 = vld [vmem:[%s4813_s6 + $0x240] sm:$0xff] }
 0x481   : > { %4897 = vst [vmem:[#allocation17_spill] sm:$0xff] %v4428_v25  ;;  %2202 = vmatmul.f32.gmra.mxu2 %v1848_v38 }
 0x482   : > { %2315 = vmatmul.f32.gmra.mxu3 %v1849_v26  ;;  %1979 = vmatmul.f32.gmra.mxu0 %v1850_v30  ;;  %v1854_v30 = vmul.f32 %v1726_v20, %v4902_v28  ;;  %v1853_v26 = vmul.f32 %v1725_v33, %v4903_v10  ;;  %v1729_v20 = vld [vmem:[%s4813_s6 + $0x218] sm:$0xff] }
 0x483   : > { %2092 = vmatmul.f32.gmra.mxu1 %v1851_v31  ;;  %v1727_v31 = vld [vmem:[%s4813_s6 + $0x208] sm:$0xff] }
 0x484   : > { %v4434_v58 = vpop.f32.mrf.mxu2 }
 0x485   : > { %4899 = vst [vmem:[#allocation7_spill] sm:$0xff] %v4434_v58  ;;  %v4442_v21 = vpop.f32.mrf.mxu3  ;;  %v1855_v58 = vmul.f32 %v1727_v31, %v4904_v15 }
 0x486   : > { %4900 = vst [vmem:[#allocation8_spill] sm:$0xff] %v4442_v21  ;;  %v1728_v21 = vld [vmem:[%s4813_s6 + $0x210] sm:$0xff] }
 0x487   : > { %v1935_v38 = vpop.f32.mrf.mxu0  ;;  %v1856_v33 = vmul.f32 %v1728_v21, %v4098_v0 }
 0x488   : > { %v2048_v25 = vpop.f32.mrf.mxu1 }
 0x489   : > { %2205 = vmatmul.f32.gmra.mxu2 %v1852_v1  ;;  %v1857_v1 = vmul.f32 %v1729_v20, %v4106_v42  ;;  %v2049_v10 = vadd.f32 %v2048_v25, %v1935_v38  ;;  %v1733_v42 = vld [vmem:[%s4813_s6 + $0x238] sm:$0xff]  ;;  %v1735_v25 = vld [vmem:[%s4813_s6 + $0x248] sm:$0xff] }
 0x48a   : > { %2318 = vmatmul.f32.gmra.mxu3 %v1853_v26  ;;  %1982 = vmatmul.f32.gmra.mxu0 %v1854_v30  ;;  %v1732_v26 = vld [vmem:[%s4813_s6 + $0x230] sm:$0xff] }
 0x48b   : > { %2095 = vmatmul.f32.gmra.mxu1 %v1855_v58  ;;  %v1731_v58 = vld [vmem:[%s4813_s6 + $0x228] sm:$0xff]  ;;  %v1860_v38 = vmul.f32 %v1732_v26, %v4122_v44  ;;  %v1736_v44 = vld [vmem:[%s4813_s6 + $0x250] sm:$0xff] }
 0x48c   : > { %v4455_v16 = vpop.f32.mrf.mxu2  ;;  %v1859_v30 = vmul.f32 %v1731_v58, %v4092_v63  ;;  %v1862_v58 = vmul.f32 %v1734_v35, %v4112_v14  ;;  %v1738_v14 = vld [vmem:[%s4813_s6 + $0x260] sm:$0xff] }
 0x48d   : > { %v4463_v15 = vpop.f32.mrf.mxu3 }
 0x48f   : > { %v1938_v31 = vpop.f32.mrf.mxu0 }
 0x490   : > { %v2051_v28 = vpop.f32.mrf.mxu1 }
 0x491   : > { %2208 = vmatmul.f32.gmra.mxu2 %v1856_v33  ;;  %v1861_v33 = vmul.f32 %v1733_v42, %v4130_v51  ;;  %v1866_v42 = vmul.f32 %v1738_v14, %v4136_v37  ;;  %v1742_v37 = vld [vmem:[%s4813_s6 + $0x280] sm:$0xff] }
 0x492   : > { %2321 = vmatmul.f32.gmra.mxu3 %v1857_v1  ;;  %1985 = vmatmul.f32.gmra.mxu0 %v1858_v23  ;;  %v1863_v1 = vmul.f32 %v1735_v25, %v4116_v36  ;;  %v1737_v36 = vld [vmem:[%s4813_s6 + $0x258] sm:$0xff] }
 0x493   : > { %2098 = vmatmul.f32.gmra.mxu1 %v1859_v30  ;;  %v2052_v30 = vadd.f32 %v2051_v28, %v1938_v31  ;;  %v1739_v31 = vld [vmem:[%s4813_s6 + $0x268] sm:$0xff]  ;;  %v1864_v28 = vmul.f32 %v1736_v44, %v4146_v61  ;;  %v1740_v61 = vld [vmem:[%s4813_s6 + $0x270] sm:$0xff] }
 0x494   : > { %v2161_v0 = vpop.f32.mrf.mxu2  ;;  %v1867_v25 = vmul.f32 %v1739_v31, %v4140_v9  ;;  %v1741_v9 = vld [vmem:[%s4813_s6 + $0x278] sm:$0xff]  ;;  %v1747_v31 = vld [vmem:[%s4813_s6 + $0x2a8] sm:$0xff] }
 0x495   : > { %v2162_v63 = vadd.f32 %v2161_v0, %v2049_v10  ;;  %v2274_v21 = vpop.f32.mrf.mxu3  ;;  %v1869_v44 = vmul.f32 %v1741_v9, %v4178_v52 }
 0x497   : > { %v2275_v46 = vadd.f32 %v2274_v21, %v2162_v63  ;;  %v1941_v20 = vpop.f32.mrf.mxu0  ;;  %v1865_v63 = vmul.f32 %v1737_v36, %v4154_v45 }
 0x498   : > { %v2054_v23 = vpop.f32.mrf.mxu1 }
 0x499   : > { %2370 = vst.msk [vmem:[%s4487_s23] sm:$0xff] %vm387_vm0, %v2275_v46  ;;  %2211 = vmatmul.f32.gmra.mxu2 %v1860_v38  ;;  %v2055_v38 = vadd.f32 %v2054_v23, %v1941_v20  ;;  %v1743_v20 = vld [vmem:[%s4813_s6 + $0x288] sm:$0xff] }
 0x49a   : > { %2324 = vmatmul.f32.gmra.mxu3 %v1861_v33  ;;  %1988 = vmatmul.f32.gmra.mxu0 %v1862_v58  ;;  %v1868_v33 = vmul.f32 %v1740_v61, %v4170_v29  ;;  %v1871_v14 = vmul.f32 %v1743_v20, %v4164_v24  ;;  %v1744_v29 = vld [vmem:[%s4813_s6 + $0x290] sm:$0xff]  ;;  %v1745_v24 = vld [vmem:[%s4813_s6 + $0x298] sm:$0xff] }
 0x49b   : > { %2101 = vmatmul.f32.gmra.mxu1 %v1863_v1 }
 0x49c   : > { %v2164_v10 = vpop.f32.mrf.mxu2 }
 0x49d   : > { %v2165_v51 = vadd.f32 %v2164_v10, %v2052_v30  ;;  %v2277_v26 = vpop.f32.mrf.mxu3  ;;  %v1870_v30 = vmul.f32 %v1742_v37, %v4160_v43  ;;  %v1746_v43 = vld [vmem:[%s4813_s6 + $0x2a0] sm:$0xff]  ;;  %v1751_v37 = vld [vmem:[%s4813_s6 + $0x2c8] sm:$0xff] }
 0x49f   : > { %v2278_v0 = vadd.f32 %v2277_v26, %v2165_v51  ;;  %v1944_v35 = vpop.f32.mrf.mxu0 }
 0x4a0   : > { %v2057_v21 = vpop.f32.mrf.mxu1 }
 0x4a1   : > { %2371 = vst.msk [vmem:[%s4487_s23 + $0x8] sm:$0xff] %vm387_vm0, %v2278_v0  ;;  %2214 = vmatmul.f32.gmra.mxu2 %v1864_v28  ;;  %v2058_v36 = vadd.f32 %v2057_v21, %v1944_v35  ;;  %v1872_v28 = vmul.f32 %v1744_v29, %v4194_v40  ;;  %v1748_v40 = vld [vmem:[%s4813_s6 + $0x2b0] sm:$0xff] }
 0x4a2   : > { %2327 = vmatmul.f32.gmra.mxu3 %v1865_v63  ;;  %1991 = vmatmul.f32.gmra.mxu0 %v1866_v42  ;;  %v1874_v42 = vmul.f32 %v1746_v43, %v4184_v53  ;;  %v1873_v63 = vmul.f32 %v1745_v24, %v4202_v60  ;;  %v1750_v53 = vld [vmem:[%s4813_s6 + $0x2c0] sm:$0xff]  ;;  %v1876_v9 = vmul.f32 %v1748_v40, %v4218_v50  ;;  %v1752_v50 = vld [vmem:[%s4813_s6 + $0x2d0] sm:$0xff] }
 0x4a3   : > { %2104 = vmatmul.f32.gmra.mxu1 %v1867_v25  ;;  %v1875_v25 = vmul.f32 %v1747_v31, %v4188_v19  ;;  %v1749_v19 = vld [vmem:[%s4813_s6 + $0x2b8] sm:$0xff]  ;;  %v1878_v20 = vmul.f32 %v1750_v53, %v4208_v59  ;;  %v1754_v59 = vld [vmem:[%s4813_s6 + $0x2e0] sm:$0xff] }
 0x4a4   : > { %v2167_v46 = vpop.f32.mrf.mxu2  ;;  %v1882_v43 = vmul.f32 %v1754_v59, %v4232_v41  ;;  %v1758_v41 = vld [vmem:[%s4813_s6 + $0x300] sm:$0xff] }
 0x4a5   : > { %v2168_v45 = vadd.f32 %v2167_v46, %v2055_v38  ;;  %v2280_v58 = vpop.f32.mrf.mxu3 }
 0x4a7   : > { %v2281_v23 = vadd.f32 %v2280_v58, %v2168_v45  ;;  %v1947_v1 = vpop.f32.mrf.mxu0 }
 0x4a8   : > { %v2060_v10 = vpop.f32.mrf.mxu1 }
 0x4a9   : > { %2372 = vst.msk [vmem:[%s4487_s23 + $0x10] sm:$0xff] %vm387_vm0, %v2281_v23  ;;  %2217 = vmatmul.f32.gmra.mxu2 %v1868_v33  ;;  %v2061_v38 = vadd.f32 %v2060_v10, %v1947_v1  ;;  %v1877_v33 = vmul.f32 %v1749_v19, %v4226_v6  ;;  %v1879_v1 = vmul.f32 %v1751_v37, %v4212_v34  ;;  %v1753_v34 = vld [vmem:[%s4813_s6 + $0x2d8] sm:$0xff] }
 0x4aa   : > { %2330 = vmatmul.f32.gmra.mxu3 %v1869_v44  ;;  %1994 = vmatmul.f32.gmra.mxu0 %v1870_v30  ;;  %v1881_v24 = vmul.f32 %v1753_v34, %v4250_v5 }
 0x4ab   : > { %2107 = vmatmul.f32.gmra.mxu1 %v1871_v14  ;;  %v1755_v14 = vld [vmem:[%s4813_s6 + $0x2e8] sm:$0xff] }
 0x4ac   : > { %v2170_v51 = vpop.f32.mrf.mxu2 }
 0x4ad   : > { %v2171_v52 = vadd.f32 %v2170_v51, %v2058_v36  ;;  %v2283_v26 = vpop.f32.mrf.mxu3  ;;  %v1880_v36 = vmul.f32 %v1752_v50, %v4242_v48  ;;  %v1756_v48 = vld [vmem:[%s4813_s6 + $0x2f0] sm:$0xff] }
 0x4af   : > { %v2284_v0 = vadd.f32 %v2283_v26, %v2171_v52  ;;  %v1950_v35 = vpop.f32.mrf.mxu0  ;;  %v1883_v26 = vmul.f32 %v1755_v14, %v4236_v39  ;;  %v1757_v39 = vld [vmem:[%s4813_s6 + $0x2f8] sm:$0xff] }
 0x4b0   : > { %v2063_v21 = vpop.f32.mrf.mxu1 }
 0x4b1   : > { %2373 = vst.msk [vmem:[%s4487_s23 + $0x18] sm:$0xff] %vm387_vm0, %v2284_v0  ;;  %2220 = vmatmul.f32.gmra.mxu2 %v1872_v28  ;;  %v2064_v30 = vadd.f32 %v2063_v21, %v1950_v35  ;;  %v1759_v35 = vld [vmem:[%s4813_s6 + $0x308] sm:$0xff] }
 0x4b2   : > { %2333 = vmatmul.f32.gmra.mxu3 %v1873_v63  ;;  %1997 = vmatmul.f32.gmra.mxu0 %v1874_v42  ;;  %v1884_v42 = vmul.f32 %v1756_v48, %v4266_v56  ;;  %v1760_v56 = vld [vmem:[%s4813_s6 + $0x310] sm:$0xff] }
 0x4b3   : > { %2110 = vmatmul.f32.gmra.mxu1 %v1875_v25  ;;  %v1886_v25 = vmul.f32 %v1758_v41, %v4256_v62  ;;  %v1762_v62 = vld [vmem:[%s4813_s6 + $0x320] sm:$0xff]  ;;  %v1888_v37 = vmul.f32 %v1760_v56, %v4290_v54  ;;  %v1764_v54 = vld [vmem:[%s4813_s6 + $0x330] sm:$0xff] }
 0x4b4   : > { %v2173_v61 = vpop.f32.mrf.mxu2  ;;  %v1892_v59 = vmul.f32 %v1764_v54, %v4314_v3  ;;  %v1768_v3 = vld [vmem:[%s4813_s6 + $0x350] sm:$0xff] }
 0x4b5   : > { %v2174_v60 = vadd.f32 %v2173_v61, %v2061_v38  ;;  %v2286_v46 = vpop.f32.mrf.mxu3  ;;  %v1885_v38 = vmul.f32 %v1757_v39, %v4274_v12  ;;  %v1887_v61 = vmul.f32 %v1759_v35, %v4260_v47  ;;  %v1761_v47 = vld [vmem:[%s4813_s6 + $0x318] sm:$0xff] }
 0x4b7   : > { %v2287_v45 = vadd.f32 %v2286_v46, %v2174_v60  ;;  %v1953_v58 = vpop.f32.mrf.mxu0  ;;  %v1763_v46 = vld [vmem:[%s4813_s6 + $0x328] sm:$0xff] }
 0x4b8   : > { %v2066_v23 = vpop.f32.mrf.mxu1 }
 0x4b9   : > { %2374 = vst.msk [vmem:[%s4487_s23 + $0x20] sm:$0xff] %vm387_vm0, %v2287_v45  ;;  %2223 = vmatmul.f32.gmra.mxu2 %v1876_v9  ;;  %v2067_v31 = vadd.f32 %v2066_v23, %v1953_v58  ;;  %v1890_v58 = vmul.f32 %v1762_v62, %v4280_v7  ;;  %v1891_v23 = vmul.f32 %v1763_v46, %v4284_v49  ;;  %v1766_v7 = vld [vmem:[%s4813_s6 + $0x340] sm:$0xff]  ;;  %v1765_v49 = vld [vmem:[%s4813_s6 + $0x338] sm:$0xff] }
 0x4ba   : > { %2336 = vmatmul.f32.gmra.mxu3 %v1877_v33  ;;  %2000 = vmatmul.f32.gmra.mxu0 %v1878_v20  ;;  %v1889_v20 = vmul.f32 %v1761_v47, %v4298_v17  ;;  %v1893_v14 = vmul.f32 %v1765_v49, %v4322_v22 }
 0x4bb   : > { %2113 = vmatmul.f32.gmra.mxu1 %v1879_v1 }
 0x4bc   : > { %v2176_v44 = vpop.f32.mrf.mxu2 }
 0x4bd   : > { %v2177_v6 = vadd.f32 %v2176_v44, %v2064_v30  ;;  %v2289_v10 = vpop.f32.mrf.mxu3  ;;  %v1767_v44 = vld [vmem:[%s4813_s6 + $0x348] sm:$0xff] }
 0x4bf   : > { %v2290_v29 = vadd.f32 %v2289_v10, %v2177_v6  ;;  %v1956_v51 = vpop.f32.mrf.mxu0  ;;  %v1894_v10 = vmul.f32 %v1766_v7, %v4304_v8  ;;  %v1770_v8 = vld [vmem:[%s4813_s6 + $0x360] sm:$0xff]  ;;  %v1780_v7 = vld [vmem:[%s4813_s6 + $0x3b0] sm:$0xff] }
 0x4c0   : > { %v2069_v52 = vpop.f32.mrf.mxu1 }
 0x4c1   : > { %2375 = vst.msk [vmem:[%s4487_s23 + $0x28] sm:$0xff] %vm387_vm0, %v2290_v29  ;;  %2226 = vmatmul.f32.gmra.mxu2 %v1880_v36  ;;  %v2070_v53 = vadd.f32 %v2069_v52, %v1956_v51  ;;  %v1895_v29 = vmul.f32 %v1767_v44, %v4308_v57  ;;  %v1769_v57 = vld [vmem:[%s4813_s6 + $0x358] sm:$0xff]  ;;  %v1771_v52 = vld [vmem:[%s4813_s6 + $0x368] sm:$0xff] }
 0x4c2   : > { %2339 = vmatmul.f32.gmra.mxu3 %v1881_v24  ;;  %2003 = vmatmul.f32.gmra.mxu0 %v1882_v43  ;;  %v1897_v41 = vmul.f32 %v1769_v57, %v4346_v27  ;;  %v4912_v57 = vld [vmem:[#allocation6_spill] sm:$0xff] }
 0x4c3   : > { %2116 = vmatmul.f32.gmra.mxu1 %v1883_v26  ;;  %v1896_v26 = vmul.f32 %v1768_v3, %v4338_v4  ;;  %v1772_v4 = vld [vmem:[%s4813_s6 + $0x370] sm:$0xff]  ;;  %v4911_v3 = vld [vmem:[#allocation13_spill] sm:$0xff] }
 0x4c4   : > { %v2179_v28 = vpop.f32.mrf.mxu2 }
 0x4c5   : > { %v2180_v5 = vadd.f32 %v2179_v28, %v2067_v31  ;;  %v2292_v0 = vpop.f32.mrf.mxu3  ;;  %v1898_v28 = vmul.f32 %v1770_v8, %v4328_v13  ;;  %v1774_v13 = vld [vmem:[%s4813_s6 + $0x380] sm:$0xff] }
 0x4c7   : > { %v2293_v63 = vadd.f32 %v2292_v0, %v2180_v5  ;;  %v1959_v21 = vpop.f32.mrf.mxu0  ;;  %v1899_v5 = vmul.f32 %v1771_v52, %v4332_v55  ;;  %v1773_v55 = vld [vmem:[%s4813_s6 + $0x378] sm:$0xff]  ;;  %v1784_v52 = vld [vmem:[%s4813_s6 + $0x3d0] sm:$0xff] }
 0x4c8   : > { %v2072_v40 = vpop.f32.mrf.mxu1 }
 0x4c9   : > { %2376 = vst.msk [vmem:[%s4487_s23 + $0x30] sm:$0xff] %vm387_vm0, %v2293_v63  ;;  %2229 = vmatmul.f32.gmra.mxu2 %v1884_v42  ;;  %v2073_v1 = vadd.f32 %v2072_v40, %v1959_v21  ;;  %v1775_v63 = vld [vmem:[%s4813_s6 + $0x388] sm:$0xff]  ;;  %v1900_v21 = vmul.f32 %v1772_v4, %v4362_v11  ;;  %v1902_v40 = vmul.f32 %v1774_v13, %v4352_v18  ;;  %v1776_v11 = vld [vmem:[%s4813_s6 + $0x390] sm:$0xff]  ;;  %v1778_v18 = vld [vmem:[%s4813_s6 + $0x3a0] sm:$0xff] }
 0x4ca   : > { %2342 = vmatmul.f32.gmra.mxu3 %v1885_v38  ;;  %2006 = vmatmul.f32.gmra.mxu0 %v1886_v25  ;;  %v1903_v56 = vmul.f32 %v1775_v63, %v4356_v2  ;;  %v1777_v2 = vld [vmem:[%s4813_s6 + $0x398] sm:$0xff] }
 0x4cb   : > { %2119 = vmatmul.f32.gmra.mxu1 %v1887_v61  ;;  %v1901_v61 = vmul.f32 %v1773_v55, %v4370_v32  ;;  %v4914_v13 = vld [vmem:[#allocation12_spill] sm:$0xff] }
 0x4cc   : > { %v2182_v19 = vpop.f32.mrf.mxu2 }
 0x4cd   : > { %v2183_v12 = vadd.f32 %v2182_v19, %v2070_v53  ;;  %v2295_v60 = vpop.f32.mrf.mxu3 }
 0x4cf   : > { %v2296_v9 = vadd.f32 %v2295_v60, %v2183_v12  ;;  %v1962_v45 = vpop.f32.mrf.mxu0  ;;  %v1779_v12 = vld [vmem:[%s4813_s6 + $0x3a8] sm:$0xff]  ;;  %v4905_v60 = vld [vmem:[#allocation15_spill] sm:$0xff] }
 0x4d0   : > { %v2075_v33 = vpop.f32.mrf.mxu1  ;;  %v1904_v46 = vmul.f32 %v1776_v11, %v4905_v60 }
 0x4d1   : > { %2377 = vst.msk [vmem:[%s4487_s23 + $0x38] sm:$0xff] %vm387_vm0, %v2296_v9  ;;  %2232 = vmatmul.f32.gmra.mxu2 %v1888_v37  ;;  %v2076_v51 = vadd.f32 %v2075_v33, %v1962_v45  ;;  %v4906_v45 = vld [vmem:[#allocation11_spill] sm:$0xff] }
 0x4d2   : > { %2345 = vmatmul.f32.gmra.mxu3 %v1889_v20  ;;  %2009 = vmatmul.f32.gmra.mxu0 %v1890_v58  ;;  %v1906_v58 = vmul.f32 %v1778_v18, %v4906_v45  ;;  %v4907_v20 = vld [vmem:[#allocation18_spill] sm:$0xff] }
 0x4d3   : > { %2122 = vmatmul.f32.gmra.mxu1 %v1891_v23  ;;  %v1905_v33 = vmul.f32 %v1777_v2, %v4907_v20 }
 0x4d4   : > { %v2185_v30 = vpop.f32.mrf.mxu2 }
 0x4d5   : > { %v2186_v17 = vadd.f32 %v2185_v30, %v2073_v1  ;;  %v2298_v50 = vpop.f32.mrf.mxu3  ;;  %v4908_v1 = vld [vmem:[#allocation14_spill] sm:$0xff] }
 0x4d6   : > { %v1907_v54 = vmul.f32 %v1779_v12, %v4908_v1 }
 0x4d7   : > { %v2299_v34 = vadd.f32 %v2298_v50, %v2186_v17  ;;  %v1965_v6 = vpop.f32.mrf.mxu0  ;;  %v1782_v17 = vld [vmem:[%s4813_s6 + $0x3c0] sm:$0xff]  ;;  %v1781_v50 = vld [vmem:[%s4813_s6 + $0x3b8] sm:$0xff] }
 0x4d8   : > { %v2078_v36 = vpop.f32.mrf.mxu1 }
 0x4d9   : > { %2378 = vst.msk [vmem:[%s4487_s23 + $0x40] sm:$0xff] %vm387_vm0, %v2299_v34  ;;  %2235 = vmatmul.f32.gmra.mxu2 %v1892_v59  ;;  %v2079_v0 = vadd.f32 %v2078_v36, %v1965_v6  ;;  %v1783_v34 = vld [vmem:[%s4813_s6 + $0x3c8] sm:$0xff]  ;;  %v4909_v6 = vld [vmem:[#allocation5_spill] sm:$0xff] }
 0x4da   : > { %2348 = vmatmul.f32.gmra.mxu3 %v1893_v14  ;;  %2012 = vmatmul.f32.gmra.mxu0 %v1894_v10  ;;  %v1908_v10 = vmul.f32 %v1780_v7, %v4909_v6 }
 0x4db   : > { %2125 = vmatmul.f32.gmra.mxu1 %v1895_v29  ;;  %v4910_v29 = vld [vmem:[#allocation19_spill] sm:$0xff] }
 0x4dc   : > { %v2188_v43 = vpop.f32.mrf.mxu2 }
 0x4dd   : > { %v2189_v22 = vadd.f32 %v2188_v43, %v2076_v51  ;;  %v2301_v24 = vpop.f32.mrf.mxu3  ;;  %v1910_v51 = vmul.f32 %v1782_v17, %v4910_v29  ;;  %v1909_v43 = vmul.f32 %v1781_v50, %v4911_v3 }
 0x4df   : > { %v2302_v31 = vadd.f32 %v2301_v24, %v2189_v22  ;;  %v1968_v48 = vpop.f32.mrf.mxu0  ;;  %v1911_v22 = vmul.f32 %v1783_v34, %v4912_v57 }
 0x4e0   : > { %v2081_v39 = vpop.f32.mrf.mxu1 }
 0x4e1   : > { %2379 = vst.msk [vmem:[%s4487_s23 + $0x48] sm:$0xff] %vm387_vm0, %v2302_v31  ;;  %2238 = vmatmul.f32.gmra.mxu2 %v1896_v26  ;;  %v2082_v19 = vadd.f32 %v2081_v39, %v1968_v48  ;;  %v1786_v31 = vld [vmem:[%s4813_s6 + $0x3e0] sm:$0xff]  ;;  %v1785_v48 = vld [vmem:[%s4813_s6 + $0x3d8] sm:$0xff]  ;;  %v1787_v39 = vld [vmem:[%s4813_s6 + $0x3e8] sm:$0xff] }
 0x4e2   : > { %2351 = vmatmul.f32.gmra.mxu3 %v1897_v41  ;;  %2015 = vmatmul.f32.gmra.mxu0 %v1898_v28  ;;  %v1914_v55 = vmul.f32 %v1786_v31, %v4914_v13 }
 0x4e3   : > { %2128 = vmatmul.f32.gmra.mxu1 %v1899_v5  ;;  %v4913_v5 = vld [vmem:[#allocation7_spill] sm:$0xff] }
 0x4e4   : > { %v2191_v35 = vpop.f32.mrf.mxu2 }
 0x4e5   : > { %v2192_v27 = vadd.f32 %v2191_v35, %v2079_v0  ;;  %v2304_v42 = vpop.f32.mrf.mxu3  ;;  %v1912_v0 = vmul.f32 %v1784_v52, %v4913_v5 }
 0x4e7   : > { %v2305_v25 = vadd.f32 %v2304_v42, %v2192_v27  ;;  %v1971_v38 = vpop.f32.mrf.mxu0  ;;  %v4915_v27 = vld [vmem:[#allocation8_spill] sm:$0xff] }
 0x4e8   : > { %v2084_v53 = vpop.f32.mrf.mxu1  ;;  %v1913_v42 = vmul.f32 %v1785_v48, %v4915_v27 }
 0x4e9   : > { %2380 = vst.msk [vmem:[%s4487_s23 + $0x50] sm:$0xff] %vm387_vm0, %v2305_v25  ;;  %2241 = vmatmul.f32.gmra.mxu2 %v1900_v21  ;;  %v2085_v30 = vadd.f32 %v2084_v53, %v1971_v38  ;;  %v4916_v21 = vld [vmem:[#allocation17_spill] sm:$0xff]  ;;  %v1789_v53 = vld [vmem:[%s4813_s6 + $0x3f8] sm:$0xff] }
 0x4ea   : > { %2354 = vmatmul.f32.gmra.mxu3 %v1901_v61  ;;  %2018 = vmatmul.f32.gmra.mxu0 %v1902_v40  ;;  %v1915_v25 = vmul.f32 %v1787_v39, %v4916_v21  ;;  %v1788_v40 = vld [vmem:[%s4813_s6 + $0x3f0] sm:$0xff]  ;;  %v1917_v2 = vmul.f32 %v1789_v53, %v4463_v15 }
 0x4eb   : > { %2131 = vmatmul.f32.gmra.mxu1 %v1903_v56  ;;  %v1916_v11 = vmul.f32 %v1788_v40, %v4455_v16 }
 0x4ec   : > { %v2194_v62 = vpop.f32.mrf.mxu2 }
 0x4ed   : > { %v2195_v32 = vadd.f32 %v2194_v62, %v2082_v19  ;;  %v2307_v47 = vpop.f32.mrf.mxu3 }
 0x4ef   : > { %v2308_v37 = vadd.f32 %v2307_v47, %v2195_v32  ;;  %v1974_v9 = vpop.f32.mrf.mxu0 }
 0x4f0   : > { %v2087_v23 = vpop.f32.mrf.mxu1 }
 0x4f1   : > { %2381 = vst.msk [vmem:[%s4487_s23 + $0x58] sm:$0xff] %vm387_vm0, %v2308_v37  ;;  %2244 = vmatmul.f32.gmra.mxu2 %v1904_v46  ;;  %v2088_v24 = vadd.f32 %v2087_v23, %v1974_v9 }
 0x4f2   : > { %2357 = vmatmul.f32.gmra.mxu3 %v1905_v33  ;;  %2021 = vmatmul.f32.gmra.mxu0 %v1906_v58 }
 0x4f3   : > { %2134 = vmatmul.f32.gmra.mxu1 %v1907_v54 }
 0x4f4   : > { %v2197_v49 = vpop.f32.mrf.mxu2 }
 0x4f5   : > { %v2198_v44 = vadd.f32 %v2197_v49, %v2085_v30  ;;  %v2310_v59 = vpop.f32.mrf.mxu3 }
 0x4f7   : > { %v2311_v14 = vadd.f32 %v2310_v59, %v2198_v44  ;;  %v1977_v36 = vpop.f32.mrf.mxu0 }
 0x4f8   : > { %v2090_v8 = vpop.f32.mrf.mxu1 }
 0x4f9   : > { %2382 = vst.msk [vmem:[%s4487_s23 + $0x60] sm:$0xff] %vm387_vm0, %v2311_v14  ;;  %2247 = vmatmul.f32.gmra.mxu2 %v1908_v10  ;;  %v2091_v38 = vadd.f32 %v2090_v8, %v1977_v36 }
 0x4fa   : > { %2360 = vmatmul.f32.gmra.mxu3 %v1909_v43  ;;  %2024 = vmatmul.f32.gmra.mxu0 %v1910_v51 }
 0x4fb   : > { %2137 = vmatmul.f32.gmra.mxu1 %v1911_v22 }
 0x4fc   : > { %v2200_v26 = vpop.f32.mrf.mxu2 }
 0x4fd   : > { %v2201_v28 = vadd.f32 %v2200_v26, %v2088_v24  ;;  %v2313_v41 = vpop.f32.mrf.mxu3 }
 0x4ff   : > { %v2314_v4 = vadd.f32 %v2313_v41, %v2201_v28  ;;  %v1980_v35 = vpop.f32.mrf.mxu0 }
 0x500   : > { %v2093_v63 = vpop.f32.mrf.mxu1 }
 0x501   : > { %2383 = vst.msk [vmem:[%s4487_s23 + $0x68] sm:$0xff] %vm387_vm0, %v2314_v4  ;;  %2250 = vmatmul.f32.gmra.mxu2 %v1912_v0  ;;  %v2094_v47 = vadd.f32 %v2093_v63, %v1980_v35 }
 0x502   : > { %2363 = vmatmul.f32.gmra.mxu3 %v1913_v42  ;;  %2027 = vmatmul.f32.gmra.mxu0 %v1914_v55 }
 0x503   : > { %2140 = vmatmul.f32.gmra.mxu1 %v1915_v25 }
 0x504   : > { %v2203_v61 = vpop.f32.mrf.mxu2 }
 0x505   : > { %v2204_v56 = vadd.f32 %v2203_v61, %v2091_v38  ;;  %v2316_v19 = vpop.f32.mrf.mxu3 }
 0x507   : > { %v2317_v62 = vadd.f32 %v2316_v19, %v2204_v56  ;;  %v1983_v18 = vpop.f32.mrf.mxu0 }
 0x508   : > { %v2096_v32 = vpop.f32.mrf.mxu1 }
 0x509   : > { %2384 = vst.msk [vmem:[%s4487_s23 + $0x70] sm:$0xff] %vm387_vm0, %v2317_v62  ;;  %2253 = vmatmul.f32.gmra.mxu2 %v1916_v11  ;;  %v2097_v9 = vadd.f32 %v2096_v32, %v1983_v18 }
 0x50a   : > { %2366 = vmatmul.f32.gmra.mxu3 %v1917_v2 }
 0x50c   : > { %v2206_v12 = vpop.f32.mrf.mxu2 }
 0x50d   : > { %v2207_v60 = vadd.f32 %v2206_v12, %v2094_v47  ;;  %v2319_v46 = vpop.f32.mrf.mxu3 }
 0x50f   : > { %v2320_v37 = vadd.f32 %v2319_v46, %v2207_v60  ;;  %v1986_v16 = vpop.f32.mrf.mxu0 }
 0x510   : > { %v2099_v15 = vpop.f32.mrf.mxu1 }
 0x511   : > { %2385 = vst.msk [vmem:[%s4487_s23 + $0x78] sm:$0xff] %vm387_vm0, %v2320_v37 }
 0x512   : > { %2837 = shalt.err (!%p2834_p4)
}
 0x513   : > { %2739 = dma.vmem_to_hbm [thread:$0]  (%p2957_p5), %s2426_s10, 256, %s2428_s12, %s2408_s17   ;;  %v2100_v54 = vadd.f32 %v2099_v15, %v1986_v16 }
 0x514   : > { %v2209_v45 = vpop.f32.mrf.mxu2 }
 0x515   : > { %v2210_v58 = vadd.f32 %v2209_v45, %v2097_v9  ;;  %v2322_v20 = vpop.f32.mrf.mxu3 }
 0x517   : > { %v2323_v33 = vadd.f32 %v2322_v20, %v2210_v58  ;;  %v1989_v23 = vpop.f32.mrf.mxu0 }
 0x518   : > { %v2102_v1 = vpop.f32.mrf.mxu1 }
 0x519   : > { %2386 = vst.msk [vmem:[%s4487_s23 + $0x80] sm:$0xff] %vm387_vm0, %v2323_v33  ;;  %v2103_v59 = vadd.f32 %v2102_v1, %v1989_v23 }
 0x51c   : > { %v2212_v30 = vpop.f32.mrf.mxu2 }
 0x51d   : > { %v2213_v7 = vadd.f32 %v2212_v30, %v2100_v54  ;;  %v2325_v49 = vpop.f32.mrf.mxu3 }
 0x51f   : > { %v2326_v17 = vadd.f32 %v2325_v49, %v2213_v7  ;;  %v1992_v50 = vpop.f32.mrf.mxu0 }
 0x520   : > { %v2105_v44 = vpop.f32.mrf.mxu1 }
 0x521   : > { %2387 = vst.msk [vmem:[%s4487_s23 + $0x88] sm:$0xff] %vm387_vm0, %v2326_v17  ;;  %v2106_v51 = vadd.f32 %v2105_v44, %v1992_v50 }
 0x524   : > { %v2215_v34 = vpop.f32.mrf.mxu2 }
 0x525   : > { %v2216_v6 = vadd.f32 %v2215_v34, %v2103_v59  ;;  %v2328_v10 = vpop.f32.mrf.mxu3 }
 0x527   : > { %v2329_v14 = vadd.f32 %v2328_v10, %v2216_v6  ;;  %v1995_v36 = vpop.f32.mrf.mxu0 }
 0x528   : > { %v2108_v29 = vpop.f32.mrf.mxu1 }
 0x529   : > { %2388 = vst.msk [vmem:[%s4487_s23 + $0x90] sm:$0xff] %vm387_vm0, %v2329_v14  ;;  %v2109_v52 = vadd.f32 %v2108_v29, %v1995_v36 }
 0x52c   : > { %v2218_v3 = vpop.f32.mrf.mxu2 }
 0x52d   : > { %v2219_v43 = vadd.f32 %v2218_v3, %v2106_v51  ;;  %v2331_v8 = vpop.f32.mrf.mxu3 }
 0x52f   : > { %v2332_v57 = vadd.f32 %v2331_v8, %v2219_v43  ;;  %v1998_v22 = vpop.f32.mrf.mxu0 }
 0x530   : > { %v2111_v24 = vpop.f32.mrf.mxu1 }
 0x531   : > { %2389 = vst.msk [vmem:[%s4487_s23 + $0x98] sm:$0xff] %vm387_vm0, %v2332_v57  ;;  %v2112_v5 = vadd.f32 %v2111_v24, %v1998_v22 }
 0x534   : > { %v2221_v26 = vpop.f32.mrf.mxu2 }
 0x535   : > { %v2222_v31 = vadd.f32 %v2221_v26, %v2109_v52  ;;  %v2334_v48 = vpop.f32.mrf.mxu3 }
 0x537   : > { %v2335_v28 = vadd.f32 %v2334_v48, %v2222_v31  ;;  %v2001_v41 = vpop.f32.mrf.mxu0 }
 0x538   : > { %v2114_v39 = vpop.f32.mrf.mxu1 }
 0x539   : > { %2390 = vst.msk [vmem:[%s4487_s23 + $0xa0] sm:$0xff] %vm387_vm0, %v2335_v28  ;;  %v2115_v42 = vadd.f32 %v2114_v39, %v2001_v41 }
 0x53c   : > { %v2224_v0 = vpop.f32.mrf.mxu2 }
 0x53d   : > { %v2225_v4 = vadd.f32 %v2224_v0, %v2112_v5  ;;  %v2337_v35 = vpop.f32.mrf.mxu3 }
 0x53f   : > { %v2338_v13 = vadd.f32 %v2337_v35, %v2225_v4  ;;  %v2004_v55 = vpop.f32.mrf.mxu0 }
 0x540   : > { %v2117_v27 = vpop.f32.mrf.mxu1 }
 0x541   : > { %2391 = vst.msk [vmem:[%s4487_s23 + $0xa8] sm:$0xff] %vm387_vm0, %v2338_v13  ;;  %v2118_v53 = vadd.f32 %v2117_v27, %v2004_v55 }
 0x544   : > { %v2227_v63 = vpop.f32.mrf.mxu2 }
 0x545   : > { %v2228_v21 = vadd.f32 %v2227_v63, %v2115_v42  ;;  %v2340_v25 = vpop.f32.mrf.mxu3 }
 0x547   : > { %v2341_v38 = vadd.f32 %v2340_v25, %v2228_v21  ;;  %v2007_v40 = vpop.f32.mrf.mxu0 }
 0x548   : > { %v2120_v61 = vpop.f32.mrf.mxu1 }
 0x549   : > { %2392 = vst.msk [vmem:[%s4487_s23 + $0xb0] sm:$0xff] %vm387_vm0, %v2341_v38  ;;  %v2121_v32 = vadd.f32 %v2120_v61, %v2007_v40 }
 0x54c   : > { %v2230_v56 = vpop.f32.mrf.mxu2 }
 0x54d   : > { %v2231_v19 = vadd.f32 %v2230_v56, %v2118_v53  ;;  %v2343_v11 = vpop.f32.mrf.mxu3 }
 0x54f   : > { %v2344_v62 = vadd.f32 %v2343_v11, %v2231_v19  ;;  %v2010_v18 = vpop.f32.mrf.mxu0 }
 0x550   : > { %v2123_v2 = vpop.f32.mrf.mxu1 }
 0x551   : > { %2393 = vst.msk [vmem:[%s4487_s23 + $0xb8] sm:$0xff] %vm387_vm0, %v2344_v62  ;;  %v2124_v15 = vadd.f32 %v2123_v2, %v2010_v18 }
 0x554   : > { %v2233_v47 = vpop.f32.mrf.mxu2 }
 0x555   : > { %v2234_v12 = vadd.f32 %v2233_v47, %v2121_v32  ;;  %v2346_v60 = vpop.f32.mrf.mxu3 }
 0x557   : > { %v2347_v46 = vadd.f32 %v2346_v60, %v2234_v12  ;;  %v2013_v37 = vpop.f32.mrf.mxu0 }
 0x558   : > { %v2126_v16 = vpop.f32.mrf.mxu1 }
 0x559   : > { %2394 = vst.msk [vmem:[%s4487_s23 + $0xc0] sm:$0xff] %vm387_vm0, %v2347_v46  ;;  %v2127_v1 = vadd.f32 %v2126_v16, %v2013_v37 }
 0x55c   : > { %v2236_v9 = vpop.f32.mrf.mxu2 }
 0x55d   : > { %v2237_v45 = vadd.f32 %v2236_v9, %v2124_v15  ;;  %v2349_v58 = vpop.f32.mrf.mxu3 }
 0x55f   : > { %v2350_v20 = vadd.f32 %v2349_v58, %v2237_v45  ;;  %v2016_v33 = vpop.f32.mrf.mxu0 }
 0x560   : > { %v2129_v23 = vpop.f32.mrf.mxu1 }
 0x561   : > { %2395 = vst.msk [vmem:[%s4487_s23 + $0xc8] sm:$0xff] %vm387_vm0, %v2350_v20  ;;  %v2130_v44 = vadd.f32 %v2129_v23, %v2016_v33 }
 0x564   : > { %v2239_v54 = vpop.f32.mrf.mxu2 }
 0x565   : > { %v2240_v30 = vadd.f32 %v2239_v54, %v2127_v1  ;;  %v2352_v7 = vpop.f32.mrf.mxu3 }
 0x567   : > { %v2353_v49 = vadd.f32 %v2352_v7, %v2240_v30  ;;  %v2019_v17 = vpop.f32.mrf.mxu0 }
 0x568   : > { %v2132_v50 = vpop.f32.mrf.mxu1 }
 0x569   : > { %2396 = vst.msk [vmem:[%s4487_s23 + $0xd0] sm:$0xff] %vm387_vm0, %v2353_v49  ;;  %v2133_v14 = vadd.f32 %v2132_v50, %v2019_v17 }
 0x56c   : > { %v2242_v59 = vpop.f32.mrf.mxu2 }
 0x56d   : > { %v2243_v34 = vadd.f32 %v2242_v59, %v2130_v44  ;;  %v2355_v6 = vpop.f32.mrf.mxu3 }
 0x56f   : > { %v2356_v10 = vadd.f32 %v2355_v6, %v2243_v34  ;;  %v2022_v36 = vpop.f32.mrf.mxu0 }
 0x570   : > { %v2135_v29 = vpop.f32.mrf.mxu1 }
 0x571   : > { %2397 = vst.msk [vmem:[%s4487_s23 + $0xd8] sm:$0xff] %vm387_vm0, %v2356_v10  ;;  %v2136_v57 = vadd.f32 %v2135_v29, %v2022_v36 }
 0x574   : > { %v2245_v51 = vpop.f32.mrf.mxu2 }
 0x575   : > { %v2246_v3 = vadd.f32 %v2245_v51, %v2133_v14  ;;  %v2358_v43 = vpop.f32.mrf.mxu3 }
 0x577   : > { %v2359_v8 = vadd.f32 %v2358_v43, %v2246_v3  ;;  %v2025_v26 = vpop.f32.mrf.mxu0 }
 0x578   : > { %v2138_v31 = vpop.f32.mrf.mxu1 }
 0x579   : > { %2398 = vst.msk [vmem:[%s4487_s23 + $0xe0] sm:$0xff] %vm387_vm0, %v2359_v8  ;;  %v2139_v28 = vadd.f32 %v2138_v31, %v2025_v26 }
 0x57c   : > { %v2248_v22 = vpop.f32.mrf.mxu2 }
 0x57d   : > { %v2249_v24 = vadd.f32 %v2248_v22, %v2136_v57  ;;  %v2361_v52 = vpop.f32.mrf.mxu3 }
 0x57f   : > { %v2362_v48 = vadd.f32 %v2361_v52, %v2249_v24  ;;  %v2028_v4 = vpop.f32.mrf.mxu0 }
 0x580   : > { %v2141_v35 = vpop.f32.mrf.mxu1 }
 0x581   : > { %2399 = vst.msk [vmem:[%s4487_s23 + $0xe8] sm:$0xff] %vm387_vm0, %v2362_v48  ;;  %v2142_v13 = vadd.f32 %v2141_v35, %v2028_v4 }
 0x584   : > { %v2251_v41 = vpop.f32.mrf.mxu2 }
 0x585   : > { %v2252_v39 = vadd.f32 %v2251_v41, %v2139_v28  ;;  %v2364_v5 = vpop.f32.mrf.mxu3 }
 0x587   : > { %v2365_v0 = vadd.f32 %v2364_v5, %v2252_v39 }
 0x589   : > { %2400 = vst.msk [vmem:[%s4487_s23 + $0xf0] sm:$0xff] %vm387_vm0, %v2365_v0 }
 0x58c   : > { %v2254_v55 = vpop.f32.mrf.mxu2 }
 0x58d   : > { %v2255_v27 = vadd.f32 %v2254_v55, %v2142_v13  ;;  %v2367_v42 = vpop.f32.mrf.mxu3 }
 0x58f   : > { %v2368_v63 = vadd.f32 %v2367_v42, %v2255_v27 }
 0x591   : > { %2401 = vst.msk [vmem:[%s4487_s23 + $0xf8] sm:$0xff] %vm387_vm0, %v2368_v63 }
 0x592 PF: > { %p2745_p5 = scmp.ge.s32.totalorder %s2872_s30, 2  ;;  %s2447_s15 = sand.u32 1, %s2860_s27  }
 0x593   : > { %s2448_s25 = scalar_lea.sflag [#allocation3], %s2447_s15 }
 0x594   : > { %p2742_p7 = pnand %p2745_p5, %p2961_p6 }
 0x596   : > { %p2743_p8 = pneg %p2742_p7 }
 0x598   : > { %2855 = dma.done.wait (%p2743_p8), %s2448_s25, 256  }
 0x599   : > { %2857 = vsyncadd (%p2743_p8), %s2448_s25, 4294967040  ;;  %p19_p9 = scmp.ge.s32.totalorder %s2944_s11, 4   ;;  %s4917_s27 = smov %s2864_s28 }
 0x59a   : > { %s4918_s28 = smov %s2868_s29  ;;  %s4919_s29 = smov %s2955_s14 }
 0x59b   : > { %s4920_s30 = smov %s2944_s11  ;;  %21 = sbr.rel (!%p19_p9) target bundleno = 3 (0x3), region = 95 }
 0x5a0   :  { %2454 = vsyncpa [#allocation3], 1 }
 0x5a1   :  { %2456 = vsyncpa [#allocation3 + $0x1], 1 }

</bundles_post_ra>
